<compile_context>
chip_gen: v6e
topology: v6e:2x2x1
jax: 0.10.0
libtpu: 0.0.40
codegen_flags: <defaults>
</compile_context>

<pallas_src>
import numpy as np
import jax
import jax.numpy as jnp
from jax.experimental import pallas as pl
from jax.experimental.pallas import tpu as pltpu

NEG_SLOPE = 0.01          # PyTorch nn.LeakyReLU default negative_slope
H, W = 4, 5               # spatial size implied by nn.Linear(150, 32): 25 * 2 * 3 = 150


def _round_up(x, m):
    return (x + m - 1) // m * m


# ---------------------------------------------------------------------------
# Init-time weight preprocessing (pure numpy; NOT in the forward hot path)
# ---------------------------------------------------------------------------
def _conv_as_matrix(w_oihw, b, hin, win, padding):
    """Materialize a stride-1 Conv2d as a dense matrix on NCHW-flattened vectors.

    Row index   = ci*hin*win + iy*win + ix   (NCHW flatten of the input)
    Column index= co*ho*wo  + oy*wo  + ox    (NCHW flatten of the output)
    'same' padding is baked in as zero rows for out-of-bounds taps.
    """
    w_oihw = np.asarray(w_oihw, np.float32)
    b = np.asarray(b, np.float32)
    cout, cin, kh, kw = w_oihw.shape
    if padding == "same":
        ph, pw = (kh - 1) // 2, (kw - 1) // 2
        ho, wo = hin, win
    elif padding == "valid":
        ph = pw = 0
        ho, wo = hin - kh + 1, win - kw + 1
    else:
        raise ValueError(padding)

    big = np.zeros((cin, hin, win, cout, ho, wo), np.float32)
    wt = np.transpose(w_oihw, (1, 0, 2, 3))  # (cin, cout, kh, kw)
    for i in range(kh):
        for j in range(kw):
            for oy in range(ho):
                iy = oy + i - ph
                if not (0 <= iy < hin):
                    continue
                for ox in range(wo):
                    ix = ox + j - pw
                    if not (0 <= ix < win):
                        continue
                    big[:, iy, ix, :, oy, ox] = wt[:, :, i, j]
    wmat = big.reshape(cin * hin * win, cout * ho * wo)
    bvec = np.repeat(b, ho * wo)  # bias[co] broadcast over the spatial positions
    return wmat, bvec, (ho, wo)


def _pad_mat(w, kp, npad):
    out = np.zeros((kp, npad), np.float32)
    out[: w.shape[0], : w.shape[1]] = w
    return out


def _pad_bias(b, npad):
    out = np.zeros((1, npad), np.float32)
    out[0, : b.shape[0]] = np.asarray(b, np.float32)
    return out


def pack_trunk_params(p):
    """Convert PyTorch-layout trunk params to 6 padded (Kp, Np) matmul slabs."""
    c1, b1v, (h1, w1) = _conv_as_matrix(p["c1_w"], p["c1_b"], H, W, "same")
    c2, b2v, (h2, w2) = _conv_as_matrix(p["c2_w"], p["c2_b"], h1, w1, "valid")
    c3, b3v, (h3, w3) = _conv_as_matrix(p["c3_w"], p["c3_b"], h2, w2, "same")
    # NCHW flatten order of conv3's output == nn.Flatten order, so Linear weights
    # need no extra permutation: just transpose (out,in) -> (in,out).
    mats = [c1, c2, c3,
            np.asarray(p["l1_w"], np.float32).T,
            np.asarray(p["l2_w"], np.float32).T,
            np.asarray(p["l3_w"], np.float32).T]
    biases = [b1v, b2v, b3v, p["l1_b"], p["l2_b"], p["l3_b"]]

    packed = {}
    kp = _round_up(mats[0].shape[0], 128)        # padded K of layer 1
    for i, (m, b) in enumerate(zip(mats, biases), start=1):
        assert kp >= m.shape[0], (kp, m.shape)   # prev padded N covers this K
        npad = _round_up(m.shape[1], 128)
        packed[f"w{i}"] = _pad_mat(m, kp, npad)
        packed[f"b{i}"] = _pad_bias(b, npad)
        kp = npad                                # chain: next K_pad = this N_pad
    return packed


def stack_trunks(packed0, packed1):
    """Stack the two trunks' packed params on a leading axis of size 2."""
    return {k: jnp.asarray(np.stack([packed0[k], packed1[k]])) for k in packed0}


# ---------------------------------------------------------------------------
# Fused Pallas kernel: whole trunk (6 x matmul + bias + LeakyReLU) in one call
# ---------------------------------------------------------------------------
def _ppo_fused_kernel(x_ref, w1, b1, w2, b2, w3, b3, w4, b4, w5, b5, w6, b6, o_ref):
    def layer(a, w_r, b_r):
        y = jnp.dot(a, w_r[...], preferred_element_type=jnp.float32) + b_r[...]
        return jnp.maximum(y, NEG_SLOPE * y)      # LeakyReLU: vmul + vmax

    a = x_ref[...]                                # (tm, K1p) f32, lane-padded
    a = layer(a, w1, b1)                          # conv1 (as matmul)
    a = layer(a, w2, b2)                          # conv2
    a = layer(a, w3, b3)                          # conv3
    a = layer(a, w4, b4)                          # Linear(150, 32)
    a = layer(a, w5, b5)                          # Linear(32, 32)
    o_ref[...] = layer(a, w6, b6)                 # Linear(32, 32), lane-dense store


def ppo_network_forward(obs_nchw, stacked, *, tile_m=256):
    """Forward of PPONetwork: returns (x0, x1), each (B, 32) float32."""
    B = obs_nchw.shape[0]
    k1 = obs_nchw.shape[1] * obs_nchw.shape[2] * obs_nchw.shape[3]
    k1p = stacked["w1"].shape[1]                  # padded input features
    n_out = stacked["w6"].shape[2]                # padded output lanes (128)
    n_trunks = stacked["w1"].shape[0]

    tm = min(tile_m, _round_up(B, 8))
    mp = _round_up(_round_up(B, 8), tm)

    # Runtime glue: NCHW flatten (== nn.Flatten order for the conv matrices) + pad.
    x = jnp.pad(obs_nchw.reshape(B, k1).astype(jnp.float32),
                ((0, mp - B), (0, k1p - k1)))

    def wspec(name):
        arr = stacked[name]
        return pl.BlockSpec((None,) + arr.shape[1:], lambda t, m: (t, 0, 0))

    in_specs = [pl.BlockSpec((tm, k1p), lambda t, m: (m, 0))]
    operands = [x]
    for i in range(1, 7):
        for name in (f"w{i}", f"b{i}"):
            in_specs.append(wspec(name))
            operands.append(stacked[name])

    out = pl.pallas_call(
        _ppo_fused_kernel,
        out_shape=jax.ShapeDtypeStruct((n_trunks, mp, n_out), jnp.float32),
        grid=(n_trunks, mp // tm),
        in_specs=in_specs,
        out_specs=pl.BlockSpec((None, tm, n_out), lambda t, m: (t, m, 0)),
        compiler_params=pltpu.CompilerParams(
            dimension_semantics=("parallel", "parallel")),
    )(*operands)

    return out[0, :B, :32], out[1, :B, :32]


# ---------------------------------------------------------------------------
# Param init (PyTorch layouts) and a pure-JAX reference for self-checking
# ---------------------------------------------------------------------------
def init_trunk_params(key, input_channels=26):
    ks = jax.random.split(key, 12)
    n = lambda k, shape, s=0.05: jax.random.normal(k, shape, jnp.float32) * s
    return {
        "c1_w": n(ks[0], (25, input_channels, 5, 5)), "c1_b": n(ks[1], (25,)),
        "c2_w": n(ks[2], (25, 25, 3, 3)),             "c2_b": n(ks[3], (25,)),
        "c3_w": n(ks[4], (25, 25, 3, 3)),             "c3_b": n(ks[5], (25,)),
        "l1_w": n(ks[6], (32, 150)),                  "l1_b": n(ks[7], (32,)),
        "l2_w": n(ks[8], (32, 32)),                   "l2_b": n(ks[9], (32,)),
        "l3_w": n(ks[10], (32, 32)),                  "l3_b": n(ks[11], (32,)),
    }


def _reference_forward(obs, params0, params1):
    lrelu = lambda x: jnp.where(x >= 0, x, NEG_SLOPE * x)

    def conv(x, w, b, padding):
        y = jax.lax.conv_general_dilated(
            x, w, window_strides=(1, 1),
            padding="SAME" if padding == "same" else "VALID",
            dimension_numbers=("NCHW", "OIHW", "NCHW"))
        return lrelu(y + b[None, :, None, None])

    def trunk(x, p):
        x = conv(x, p["c1_w"], p["c1_b"], "same")
        x = conv(x, p["c2_w"], p["c2_b"], "valid")
        x = conv(x, p["c3_w"], p["c3_b"], "same")
        x = x.reshape(x.shape[0], -1)
        x = lrelu(x @ p["l1_w"].T + p["l1_b"])
        x = lrelu(x @ p["l2_w"].T + p["l2_b"])
        x = lrelu(x @ p["l3_w"].T + p["l3_b"])
        return x

    return trunk(obs, params0), trunk(obs, params1)


if __name__ == "__main__":
    key = jax.random.PRNGKey(0)
    k_obs, k0, k1 = jax.random.split(key, 3)

    B, C = 2, 26
    obs = jax.random.normal(k_obs, (B, C, H, W), jnp.float32)   # NCHW like PyTorch

    params0 = init_trunk_params(k0, input_channels=C)
    params1 = init_trunk_params(k1, input_channels=C)

    # One-time weight preprocessing (conv -> matrix, padding, trunk stacking).
    stacked = stack_trunks(pack_trunk_params(params0), pack_trunk_params(params1))

    fwd = jax.jit(lambda o: ppo_network_forward(o, stacked))
    x0, x1 = fwd(obs)
    jax.block_until_ready((x0, x1))

    assert x0.shape == (B, 32) and x1.shape == (B, 32)
    assert x0.dtype == jnp.float32 and x1.dtype == jnp.float32

    # Numerical self-check against a plain-JAX reference of the PyTorch module.
    r0, r1 = _reference_forward(obs, params0, params1)
    assert jnp.allclose(x0, r0, atol=2e-4, rtol=2e-4)
    assert jnp.allclose(x1, r1, atol=2e-4, rtol=2e-4)

    print("KERNEL_OK")
</pallas_src>

<mosaic_0001>
module attributes {stable_mosaic.version = 11 : i64} {
  func.func @_ppo_fused_kernel(%arg0: i32, %arg1: i32, %arg2: memref<8x640xf32, #tpu.memory_space<vmem>>, %arg3: memref<1x640x512xf32, #tpu.memory_space<vmem>>, %arg4: memref<1x1x512xf32, #tpu.memory_space<vmem>>, %arg5: memref<1x512x256xf32, #tpu.memory_space<vmem>>, %arg6: memref<1x1x256xf32, #tpu.memory_space<vmem>>, %arg7: memref<1x256x256xf32, #tpu.memory_space<vmem>>, %arg8: memref<1x1x256xf32, #tpu.memory_space<vmem>>, %arg9: memref<1x256x128xf32, #tpu.memory_space<vmem>>, %arg10: memref<1x1x128xf32, #tpu.memory_space<vmem>>, %arg11: memref<1x128x128xf32, #tpu.memory_space<vmem>>, %arg12: memref<1x1x128xf32, #tpu.memory_space<vmem>>, %arg13: memref<1x128x128xf32, #tpu.memory_space<vmem>>, %arg14: memref<1x1x128xf32, #tpu.memory_space<vmem>>, %arg15: memref<1x8x128xf32, #tpu.memory_space<vmem>>) attributes {dimension_semantics = [#tpu.dimension_semantics<parallel>, #tpu.dimension_semantics<parallel>], iteration_bounds = array<i64: 2, 1>, scalar_prefetch = 0 : i64, scratch_operands = 0 : i64, tpu.core_type = #tpu.core_type<tc>, window_params = [{transform_indices = @transform_0, window_bounds = array<i64: 8, 640>}, {transform_indices = @transform_1, window_bounds = array<i64: 1, 640, 512>}, {transform_indices = @transform_2, window_bounds = array<i64: 1, 1, 512>}, {transform_indices = @transform_3, window_bounds = array<i64: 1, 512, 256>}, {transform_indices = @transform_4, window_bounds = array<i64: 1, 1, 256>}, {transform_indices = @transform_5, window_bounds = array<i64: 1, 256, 256>}, {transform_indices = @transform_6, window_bounds = array<i64: 1, 1, 256>}, {transform_indices = @transform_7, window_bounds = array<i64: 1, 256, 128>}, {transform_indices = @transform_8, window_bounds = array<i64: 1, 1, 128>}, {transform_indices = @transform_9, window_bounds = array<i64: 1, 128, 128>}, {transform_indices = @transform_10, window_bounds = array<i64: 1, 1, 128>}, {transform_indices = @transform_11, window_bounds = array<i64: 1, 128, 128>}, {transform_indices = @transform_12, window_bounds = array<i64: 1, 1, 128>}, {transform_indices = @transform_13, window_bounds = array<i64: 1, 8, 128>}]} {
    %c0 = arith.constant 0 : index
    %c0_0 = arith.constant 0 : index
    %0 = vector.load %arg2[%c0, %c0_0] : memref<8x640xf32, #tpu.memory_space<vmem>>, vector<8x640xf32>
    %c0_1 = arith.constant 0 : index
    %c0_2 = arith.constant 0 : index
    %c0_3 = arith.constant 0 : index
    %1 = vector.load %arg3[%c0_1, %c0_2, %c0_3] : memref<1x640x512xf32, #tpu.memory_space<vmem>>, vector<1x640x512xf32>
    %2 = vector.shape_cast %1 : vector<1x640x512xf32> to vector<640x512xf32>
    %cst = arith.constant dense<0.000000e+00> : vector<8x512xf32>
    %3 = tpu.matmul %0, %2, %cst {dimension_numbers = #tpu.dot_dimension_numbers<[1], [0], [0], [1], [0, 0, 1, 1], [], []>} : vector<8x640xf32>, vector<640x512xf32>, vector<8x512xf32> -> vector<8x512xf32>
    %c0_4 = arith.constant 0 : index
    %c0_5 = arith.constant 0 : index
    %c0_6 = arith.constant 0 : index
    %4 = vector.load %arg4[%c0_4, %c0_5, %c0_6] : memref<1x1x512xf32, #tpu.memory_space<vmem>>, vector<1x1x512xf32>
    %5 = vector.shape_cast %4 : vector<1x1x512xf32> to vector<1x512xf32>
    %6 = vector.broadcast %5 : vector<1x512xf32> to vector<8x512xf32>
    %7 = arith.addf %3, %6 : vector<8x512xf32>
    %cst_7 = arith.constant 0.00999999977 : f32
    %8 = vector.broadcast %cst_7 : f32 to vector<8x512xf32>
    %9 = arith.mulf %8, %7 : vector<8x512xf32>
    %10 = arith.maximumf %7, %9 : vector<8x512xf32>
    %c0_8 = arith.constant 0 : index
    %c0_9 = arith.constant 0 : index
    %c0_10 = arith.constant 0 : index
    %11 = vector.load %arg5[%c0_8, %c0_9, %c0_10] : memref<1x512x256xf32, #tpu.memory_space<vmem>>, vector<1x512x256xf32>
    %12 = vector.shape_cast %11 : vector<1x512x256xf32> to vector<512x256xf32>
    %cst_11 = arith.constant dense<0.000000e+00> : vector<8x256xf32>
    %13 = tpu.matmul %10, %12, %cst_11 {dimension_numbers = #tpu.dot_dimension_numbers<[1], [0], [0], [1], [0, 0, 1, 1], [], []>} : vector<8x512xf32>, vector<512x256xf32>, vector<8x256xf32> -> vector<8x256xf32>
    %c0_12 = arith.constant 0 : index
    %c0_13 = arith.constant 0 : index
    %c0_14 = arith.constant 0 : index
    %14 = vector.load %arg6[%c0_12, %c0_13, %c0_14] : memref<1x1x256xf32, #tpu.memory_space<vmem>>, vector<1x1x256xf32>
    %15 = vector.shape_cast %14 : vector<1x1x256xf32> to vector<1x256xf32>
    %16 = vector.broadcast %15 : vector<1x256xf32> to vector<8x256xf32>
    %17 = arith.addf %13, %16 : vector<8x256xf32>
    %cst_15 = arith.constant 0.00999999977 : f32
    %18 = vector.broadcast %cst_15 : f32 to vector<8x256xf32>
    %19 = arith.mulf %18, %17 : vector<8x256xf32>
    %20 = arith.maximumf %17, %19 : vector<8x256xf32>
    %c0_16 = arith.constant 0 : index
    %c0_17 = arith.constant 0 : index
    %c0_18 = arith.constant 0 : index
    %21 = vector.load %arg7[%c0_16, %c0_17, %c0_18] : memref<1x256x256xf32, #tpu.memory_space<vmem>>, vector<1x256x256xf32>
    %22 = vector.shape_cast %21 : vector<1x256x256xf32> to vector<256x256xf32>
    %cst_19 = arith.constant dense<0.000000e+00> : vector<8x256xf32>
    %23 = tpu.matmul %20, %22, %cst_19 {dimension_numbers = #tpu.dot_dimension_numbers<[1], [0], [0], [1], [0, 0, 1, 1], [], []>} : vector<8x256xf32>, vector<256x256xf32>, vector<8x256xf32> -> vector<8x256xf32>
    %c0_20 = arith.constant 0 : index
    %c0_21 = arith.constant 0 : index
    %c0_22 = arith.constant 0 : index
    %24 = vector.load %arg8[%c0_20, %c0_21, %c0_22] : memref<1x1x256xf32, #tpu.memory_space<vmem>>, vector<1x1x256xf32>
    %25 = vector.shape_cast %24 : vector<1x1x256xf32> to vector<1x256xf32>
    %26 = vector.broadcast %25 : vector<1x256xf32> to vector<8x256xf32>
    %27 = arith.addf %23, %26 : vector<8x256xf32>
    %cst_23 = arith.constant 0.00999999977 : f32
    %28 = vector.broadcast %cst_23 : f32 to vector<8x256xf32>
    %29 = arith.mulf %28, %27 : vector<8x256xf32>
    %30 = arith.maximumf %27, %29 : vector<8x256xf32>
    %c0_24 = arith.constant 0 : index
    %c0_25 = arith.constant 0 : index
    %c0_26 = arith.constant 0 : index
    %31 = vector.load %arg9[%c0_24, %c0_25, %c0_26] : memref<1x256x128xf32, #tpu.memory_space<vmem>>, vector<1x256x128xf32>
    %32 = vector.shape_cast %31 : vector<1x256x128xf32> to vector<256x128xf32>
    %cst_27 = arith.constant dense<0.000000e+00> : vector<8x128xf32>
    %33 = tpu.matmul %30, %32, %cst_27 {dimension_numbers = #tpu.dot_dimension_numbers<[1], [0], [0], [1], [0, 0, 1, 1], [], []>} : vector<8x256xf32>, vector<256x128xf32>, vector<8x128xf32> -> vector<8x128xf32>
    %c0_28 = arith.constant 0 : index
    %c0_29 = arith.constant 0 : index
    %c0_30 = arith.constant 0 : index
    %34 = vector.load %arg10[%c0_28, %c0_29, %c0_30] : memref<1x1x128xf32, #tpu.memory_space<vmem>>, vector<1x1x128xf32>
    %35 = vector.shape_cast %34 : vector<1x1x128xf32> to vector<1x128xf32>
    %36 = vector.broadcast %35 : vector<1x128xf32> to vector<8x128xf32>
    %37 = arith.addf %33, %36 : vector<8x128xf32>
    %cst_31 = arith.constant 0.00999999977 : f32
    %38 = vector.broadcast %cst_31 : f32 to vector<8x128xf32>
    %39 = arith.mulf %38, %37 : vector<8x128xf32>
    %40 = arith.maximumf %37, %39 : vector<8x128xf32>
    %c0_32 = arith.constant 0 : index
    %c0_33 = arith.constant 0 : index
    %c0_34 = arith.constant 0 : index
    %41 = vector.load %arg11[%c0_32, %c0_33, %c0_34] : memref<1x128x128xf32, #tpu.memory_space<vmem>>, vector<1x128x128xf32>
    %42 = vector.shape_cast %41 : vector<1x128x128xf32> to vector<128x128xf32>
    %cst_35 = arith.constant dense<0.000000e+00> : vector<8x128xf32>
    %43 = tpu.matmul %40, %42, %cst_35 {dimension_numbers = #tpu.dot_dimension_numbers<[1], [0], [0], [1], [0, 0, 1, 1], [], []>} : vector<8x128xf32>, vector<128x128xf32>, vector<8x128xf32> -> vector<8x128xf32>
    %c0_36 = arith.constant 0 : index
    %c0_37 = arith.constant 0 : index
    %c0_38 = arith.constant 0 : index
    %44 = vector.load %arg12[%c0_36, %c0_37, %c0_38] : memref<1x1x128xf32, #tpu.memory_space<vmem>>, vector<1x1x128xf32>
    %45 = vector.shape_cast %44 : vector<1x1x128xf32> to vector<1x128xf32>
    %46 = vector.broadcast %45 : vector<1x128xf32> to vector<8x128xf32>
    %47 = arith.addf %43, %46 : vector<8x128xf32>
    %cst_39 = arith.constant 0.00999999977 : f32
    %48 = vector.broadcast %cst_39 : f32 to vector<8x128xf32>
    %49 = arith.mulf %48, %47 : vector<8x128xf32>
    %50 = arith.maximumf %47, %49 : vector<8x128xf32>
    %c0_40 = arith.constant 0 : index
    %c0_41 = arith.constant 0 : index
    %c0_42 = arith.constant 0 : index
    %51 = vector.load %arg13[%c0_40, %c0_41, %c0_42] : memref<1x128x128xf32, #tpu.memory_space<vmem>>, vector<1x128x128xf32>
    %52 = vector.shape_cast %51 : vector<1x128x128xf32> to vector<128x128xf32>
    %cst_43 = arith.constant dense<0.000000e+00> : vector<8x128xf32>
    %53 = tpu.matmul %50, %52, %cst_43 {dimension_numbers = #tpu.dot_dimension_numbers<[1], [0], [0], [1], [0, 0, 1, 1], [], []>} : vector<8x128xf32>, vector<128x128xf32>, vector<8x128xf32> -> vector<8x128xf32>
    %c0_44 = arith.constant 0 : index
    %c0_45 = arith.constant 0 : index
    %c0_46 = arith.constant 0 : index
    %54 = vector.load %arg14[%c0_44, %c0_45, %c0_46] : memref<1x1x128xf32, #tpu.memory_space<vmem>>, vector<1x1x128xf32>
    %55 = vector.shape_cast %54 : vector<1x1x128xf32> to vector<1x128xf32>
    %56 = vector.broadcast %55 : vector<1x128xf32> to vector<8x128xf32>
    %57 = arith.addf %53, %56 : vector<8x128xf32>
    %cst_47 = arith.constant 0.00999999977 : f32
    %58 = vector.broadcast %cst_47 : f32 to vector<8x128xf32>
    %59 = arith.mulf %58, %57 : vector<8x128xf32>
    %60 = arith.maximumf %57, %59 : vector<8x128xf32>
    %c0_48 = arith.constant 0 : index
    %c0_49 = arith.constant 0 : index
    %c0_50 = arith.constant 0 : index
    %61 = vector.load %arg15[%c0_48, %c0_49, %c0_50] : memref<1x8x128xf32, #tpu.memory_space<vmem>>, vector<1x8x128xf32>
    %62 = vector.shape_cast %61 : vector<1x8x128xf32> to vector<8x128xf32>
    %63 = vector.shape_cast %60 : vector<8x128xf32> to vector<1x8x128xf32>
    tpu.vector_store %arg15[%c0_48, %c0_49, %c0_50], %63 {strides = array<i32>} : memref<1x8x128xf32, #tpu.memory_space<vmem>>, vector<1x8x128xf32>,
    return
  }
  func.func @transform_0(%arg0: i32, %arg1: i32) -> (i32, i32) {
    %c0_i32 = arith.constant 0 : i32
    %c0_i32_0 = arith.constant 0 : i32
    return %arg1, %c0_i32 : i32, i32
  }
  func.func @transform_1(%arg0: i32, %arg1: i32) -> (i32, i32, i32) {
    %c0_i32 = arith.constant 0 : i32
    %c0_i32_0 = arith.constant 0 : i32
    %c0_i32_1 = arith.constant 0 : i32
    return %arg0, %c0_i32, %c0_i32_0 : i32, i32, i32
  }
  func.func @transform_2(%arg0: i32, %arg1: i32) -> (i32, i32, i32) {
    %c0_i32 = arith.constant 0 : i32
    %c0_i32_0 = arith.constant 0 : i32
    %c0_i32_1 = arith.constant 0 : i32
    return %arg0, %c0_i32, %c0_i32_0 : i32, i32, i32
  }
  func.func @transform_3(%arg0: i32, %arg1: i32) -> (i32, i32, i32) {
    %c0_i32 = arith.constant 0 : i32
    %c0_i32_0 = arith.constant 0 : i32
    %c0_i32_1 = arith.constant 0 : i32
    return %arg0, %c0_i32, %c0_i32_0 : i32, i32, i32
  }
  func.func @transform_4(%arg0: i32, %arg1: i32) -> (i32, i32, i32) {
    %c0_i32 = arith.constant 0 : i32
    %c0_i32_0 = arith.constant 0 : i32
    %c0_i32_1 = arith.constant 0 : i32
    return %arg0, %c0_i32, %c0_i32_0 : i32, i32, i32
  }
  func.func @transform_5(%arg0: i32, %arg1: i32) -> (i32, i32, i32) {
    %c0_i32 = arith.constant 0 : i32
    %c0_i32_0 = arith.constant 0 : i32
    %c0_i32_1 = arith.constant 0 : i32
    return %arg0, %c0_i32, %c0_i32_0 : i32, i32, i32
  }
  func.func @transform_6(%arg0: i32, %arg1: i32) -> (i32, i32, i32) {
    %c0_i32 = arith.constant 0 : i32
    %c0_i32_0 = arith.constant 0 : i32
    %c0_i32_1 = arith.constant 0 : i32
    return %arg0, %c0_i32, %c0_i32_0 : i32, i32, i32
  }
  func.func @transform_7(%arg0: i32, %arg1: i32) -> (i32, i32, i32) {
    %c0_i32 = arith.constant 0 : i32
    %c0_i32_0 = arith.constant 0 : i32
    %c0_i32_1 = arith.constant 0 : i32
    return %arg0, %c0_i32, %c0_i32_0 : i32, i32, i32
  }
  func.func @transform_8(%arg0: i32, %arg1: i32) -> (i32, i32, i32) {
    %c0_i32 = arith.constant 0 : i32
    %c0_i32_0 = arith.constant 0 : i32
    %c0_i32_1 = arith.constant 0 : i32
    return %arg0, %c0_i32, %c0_i32_0 : i32, i32, i32
  }
  func.func @transform_9(%arg0: i32, %arg1: i32) -> (i32, i32, i32) {
    %c0_i32 = arith.constant 0 : i32
    %c0_i32_0 = arith.constant 0 : i32
    %c0_i32_1 = arith.constant 0 : i32
    return %arg0, %c0_i32, %c0_i32_0 : i32, i32, i32
  }
  func.func @transform_10(%arg0: i32, %arg1: i32) -> (i32, i32, i32) {
    %c0_i32 = arith.constant 0 : i32
    %c0_i32_0 = arith.constant 0 : i32
    %c0_i32_1 = arith.constant 0 : i32
    return %arg0, %c0_i32, %c0_i32_0 : i32, i32, i32
  }
  func.func @transform_11(%arg0: i32, %arg1: i32) -> (i32, i32, i32) {
    %c0_i32 = arith.constant 0 : i32
    %c0_i32_0 = arith.constant 0 : i32
    %c0_i32_1 = arith.constant 0 : i32
    return %arg0, %c0_i32, %c0_i32_0 : i32, i32, i32
  }
  func.func @transform_12(%arg0: i32, %arg1: i32) -> (i32, i32, i32) {
    %c0_i32 = arith.constant 0 : i32
    %c0_i32_0 = arith.constant 0 : i32
    %c0_i32_1 = arith.constant 0 : i32
    return %arg0, %c0_i32, %c0_i32_0 : i32, i32, i32
  }
  func.func @transform_13(%arg0: i32, %arg1: i32) -> (i32, i32, i32) {
    %c0_i32 = arith.constant 0 : i32
    %c0_i32_0 = arith.constant 0 : i32
    return %arg0, %arg1, %c0_i32 : i32, i32, i32
  }
}

</mosaic_0001>

<bundles_post_ra>
// kernel: _lambda_.1
= control target key start
LH: loop header
LB: loop body
LE: loop exit
PB: predicated region body
PF: predicated region fallthrough
CT: control target
= control target key end

     0   :  { %s4545_s0 = inlined_call_operand.vmem [shape: f32[8,640], index: 0, kind: input, shape index: {}]   ;;  %s4546_s1 = inlined_call_operand.hbm [shape: f32[2,640,512], index: 1, kind: input, shape index: {}]   ;;  %s4547_s2 = inlined_call_operand.hbm [shape: f32[2,1,512], index: 2, kind: input, shape index: {}]   ;;  %s4548_s3 = inlined_call_operand.hbm [shape: f32[2,512,256], index: 3, kind: input, shape index: {}]   ;;  %s4549_s4 = inlined_call_operand.hbm [shape: f32[2,1,256], index: 4, kind: input, shape index: {}]   ;;  %s4550_s5 = inlined_call_operand.hbm [shape: f32[2,256,256], index: 5, kind: input, shape index: {}]   ;;  %s4551_s6 = inlined_call_operand.hbm [shape: f32[2,1,256], index: 6, kind: input, shape index: {}]   ;;  %s4552_s7 = inlined_call_operand.hbm [shape: f32[2,256,128], index: 7, kind: input, shape index: {}]   ;;  %s4553_s8 = inlined_call_operand.hbm [shape: f32[2,1,128], index: 8, kind: input, shape index: {}]   ;;  %s4554_s9 = inlined_call_operand.hbm [shape: f32[2,128,128], index: 9, kind: input, shape index: {}]   ;;  %s4555_s10 = inlined_call_operand.hbm [shape: f32[2,1,128], index: 10, kind: input, shape index: {}]   ;;  %s4556_s11 = inlined_call_operand.hbm [shape: f32[2,128,128], index: 11, kind: input, shape index: {}]   ;;  %s4557_s12 = inlined_call_operand.hbm [shape: f32[2,1,128], index: 12, kind: input, shape index: {}]   ;;  %s4558_s13 = inlined_call_operand.vmem [shape: f32[2,8,128], index: 13, kind: output, shape index: {}]  }
   0x1   :  { %4573 = sst [smem:[#allocation35_spill]] %s4545_s0 }
   0x2   :  { %4574 = sst [smem:[#allocation36_spill]] %s4546_s1 }
   0x3   :  { %4575 = sst [smem:[#allocation37_spill]] %s4547_s2 }
   0x4   :  { %4576 = sst [smem:[#allocation38_spill]] %s4548_s3 }
   0x5   :  { %4577 = sst [smem:[#allocation39_spill]] %s4549_s4 }
   0x6   :  { %4578 = sst [smem:[#allocation40_spill]] %s4551_s6 }
   0x7   :  { %4579 = sst [smem:[#allocation41_spill]] %s4558_s13 }
   0x8   :  { %18 = vsyncpa [#allocation3], 0 }
   0x9   :  { %20 = vsyncpa [#allocation3 + $0x1], 0 }
   0xa   :  { %21 = vsyncpa [#allocation5], 0 }
   0xb   :  { %23 = vsyncpa [#allocation5 + $0x1], 0 }
   0xc   :  { %24 = vsyncpa [#allocation8], 0 }
   0xd   :  { %26 = vsyncpa [#allocation8 + $0x1], 0 }
   0xe   :  { %27 = vsyncpa [#allocation11], 0 }
   0xf   :  { %29 = vsyncpa [#allocation11 + $0x1], 0 }
  0x10   :  { %30 = vsyncpa [#allocation14], 0 }
  0x11   :  { %32 = vsyncpa [#allocation14 + $0x1], 0 }
  0x12   :  { %33 = vsyncpa [#allocation17], 0 }
  0x13   :  { %35 = vsyncpa [#allocation17 + $0x1], 0 }
  0x14   :  { %36 = vsyncpa [#allocation20], 0 }
  0x15   :  { %38 = vsyncpa [#allocation20 + $0x1], 0  ;;  %s3565_s25 = smov 0   ;;  %s3567_s26 = smov 0  }
  0x16   :  { %s3569_s27 = smov 0   ;;  %s3571_s28 = smov 0  }
  0x17   :  { %s3573_s29 = smov 0   ;;  %s3575_s30 = smov 0  }
  0x18 LB: > { %4580 = sst [smem:[#allocation28_spill]] %s3457_s26  ;;  %s4559_s14 = sadd.s32 4294967295, %s3473_s30   ;;  %s3473_s30 = sphi %s3575_s30, %s44_s30   ;;  %s3469_s29 = sphi %s3573_s29, %s4614_s29   ;;  %s3465_s28 = sphi %s3571_s28, %s4613_s28   ;;  %s3461_s27 = sphi %s3569_s27, %s4611_s27   ;;  %s3457_s26 = sphi %s3567_s26, %s4610_s26   ;;  %s3453_s25 = sphi %s3565_s25, %s4609_s25  }
  0x19   : > { %4581 = sst [smem:[#allocation29_spill]] %s3461_s27  ;;  %s56_s15 = sadd.s32 1, %s3469_s29 }
  0x1a   : > { %4582 = sst [smem:[#allocation30_spill]] %s3465_s28  ;;  %p58_p0 = scmp.ge.s32.totalorder %s56_s15, 2 }
  0x1b   : > { %4583 = sst [smem:[#allocation31_spill]] %s3473_s30  ;;  %s89_s16 = sadd.s32 1, %s3461_s27 }
  0x1c   : > { %p96_p1 = scmp.ne.s32.totalorder %s3461_s27, %s3457_s26  ;;  %p97_p2 = scmp.eq.s32.totalorder %s3473_s30, 0 }
  0x1d   : > { %s4616_s15 = smov (%p58_p0, %s56_s15), 0  ;;  %p102_p4 = scmp.ne.s32.totalorder %s3457_s26, %s3453_s25 }
  0x1e   : > { %4584 = sst [smem:[#allocation32_spill]] %s4616_s15  ;;  %p98_p3 = por %p97_p2, %p96_p1 }
  0x1f   : > { %s86_s17 = ssub.s32 %s3469_s29, %s4616_s15  ;;  %p103_p5 = scmp.eq.s32.totalorder %s4559_s14, 0 }
  0x20   : > { %p87_p6 = scmp.eq.s32.totalorder %s86_s17, 0  ;;  %p3006_p8 = scmp.lt.s32.totalorder %s3473_s30, 2 }
  0x21   : > { %p3606_p7 = por %p103_p5, %p102_p4  ;;  %s3615_s20 = sand.u32 1, %s3461_s27  }
  0x22   : > { %s3612_s19 = scalar_select %p87_p6, %s3461_s27, %s89_s16  }
  0x23   : > { %s4585_s18 = scalar_select %p3606_p7, 1, 0 }
  0x24   : > { %4587 = sst [smem:[#allocation34_spill]] %s3612_s19  ;;  %p3617_p9 = pnand %p3006_p8, %p98_p3 }
  0x25   : > { %4586 = sst [smem:[#allocation33_spill]] %s4585_s18  ;;  %s3622_s22 = sand.u32 1, %s3473_s30  }
  0x26   : > { %s2753_s23 = sshll.u32 %s3615_s20, 2  ;;  %s2795_s24 = sshll.u32 %s3469_s29, 6 }
  0x27   : > { %s4589_s2 = sld [smem:[#allocation37_spill]]  ;;  %s473_s15 = scalar_lea.vmem [#allocation4], %s2753_s23 }
  0x28   : > { %s481_s16 = sshll.u32 %s473_s15, 4  ;;  %p2780_p10 = scmp.ge.s32.totalorder %s3473_s30, 1  ;;  %s482_s16 = int_to_ptr.vmem [resolvable:$true] %s481_s16 }
  0x29   : > { %s4566_s19 = scalar_lea.sflag [#allocation5], %s3622_s22  ;;  %p3633_p11 = pneg %p3617_p9 }
  0x2a   : > { %s3076_s13 = scalar_lea.vmem %s482_s16, 64  ;;  %s3475_s28 = smov [#allocation4]  }
  0x2b   : > { %p3077_p12 = scmp.ne.s32.totalorder %s482_s16, %s3076_s13  ;;  %s3081_s0 = sshll.u32 %s3475_s28, 4  ;;  %s3082_s0 = int_to_ptr.vmem [resolvable:$false] %s3081_s0 }
  0x2c   : > { %p3084_p1 = scmp.lt.s32.totalorder %s482_s16, %s3082_s0 }
  0x2d   : > { %s479_s14 = scalar_lea.hbm %s4589_s2, %s2795_s24  ;;  %p3079_p13 = pnand %p3077_p12, %p3633_p11 }
  0x2e   : > { %s3083_s24 = scalar_lea.vmem %s3082_s0, 128 }
  0x2f   : > { %p3080_p0 = pneg %p3079_p13  ;;  %p3085_p2 = scmp.lt.s32.totalorder %s3083_s24, %s3076_s13 }
  0x31   : > { %p3086_p3 = por %p3085_p2, %p3084_p1 }
  0x33   : > { %p3087_p4 = pnand %p3086_p3, %p3080_p0 }
  0x35   : > { %3090 = shalt.err (!%p3087_p4)
}
  0x36   : > { %2975 = dma.hbm_to_vmem [thread:$0]  (!%p3617_p9), %s479_s14, 64, %s482_s16, %s4566_s19  }
  0x37   : > { %p680_p5 = scmp.lt.s32.totalorder %s3473_s30, 3  ;;  %s2759_s28 = sshll.u32 %s3615_s20, 1 }
  0x38   : > { %s2797_s15 = sshll.u32 %s3469_s29, 5  ;;  %s4592_s4 = sld [smem:[#allocation39_spill]] }
  0x39   : > { %p3648_p6 = pnand %p2780_p10, %p680_p5  ;;  %s513_s17 = scalar_lea.vmem [#allocation7], %s2759_s28 }
  0x3a   : > { %s521_s24 = sshll.u32 %s513_s17, 4  ;;  %s4571_s2 = scalar_lea.sflag [#allocation8], %s3622_s22  ;;  %s522_s24 = int_to_ptr.vmem [resolvable:$true] %s521_s24 }
  0x3b   : > { %s3104_s18 = scalar_lea.vmem %s522_s24, 32  ;;  %s3476_s14 = smov [#allocation7]  }
  0x3c   : > { %p3105_p8 = scmp.ne.s32.totalorder %s522_s24, %s3104_s18  ;;  %s3109_s16 = sshll.u32 %s3476_s14, 4  ;;  %s3110_s16 = int_to_ptr.vmem [resolvable:$false] %s3109_s16 }
  0x3d   : > { %s3111_s19 = scalar_lea.vmem %s3110_s16, 64  ;;  %p3112_p10 = scmp.lt.s32.totalorder %s522_s24, %s3110_s16 }
  0x3e   : > { %s519_s25 = scalar_lea.hbm %s4592_s4, %s2797_s15  ;;  %p3107_p12 = pnand %p3105_p8, %p3633_p11 }
  0x3f   : > { %p3113_p0 = scmp.lt.s32.totalorder %s3111_s19, %s3104_s18 }
  0x40   : > { %p3108_p13 = pneg %p3107_p12 }
  0x41   : > { %p3114_p1 = por %p3113_p0, %p3112_p10 }
  0x43   : > { %p3115_p2 = pnand %p3114_p1, %p3108_p13 }
  0x45   : > { %3118 = shalt.err (!%p3115_p2)
}
  0x46   : > { %2981 = dma.hbm_to_vmem [thread:$0]  (!%p3617_p9), %s519_s25, 32, %s522_s24, %s4571_s2  }
  0x47   : > { %s4593_s6 = sld [smem:[#allocation40_spill]]  ;;  %s553_s4 = scalar_lea.vmem [#allocation10], %s2759_s28 }
  0x48   : > { %s561_s14 = sshll.u32 %s553_s4, 4  ;;  %s4569_s30 = scalar_lea.sflag [#allocation11], %s3622_s22  ;;  %s562_s14 = int_to_ptr.vmem [resolvable:$true] %s561_s14 }
  0x49   : > { %s3132_s16 = scalar_lea.vmem %s562_s14, 32  ;;  %s3477_s18 = smov [#allocation10]  }
  0x4a   : > { %p3133_p3 = scmp.ne.s32.totalorder %s562_s14, %s3132_s16  ;;  %s3137_s19 = sshll.u32 %s3477_s18, 4  ;;  %s3138_s19 = int_to_ptr.vmem [resolvable:$false] %s3137_s19 }
  0x4b   : > { %s3139_s26 = scalar_lea.vmem %s3138_s19, 64  ;;  %p3140_p8 = scmp.lt.s32.totalorder %s562_s14, %s3138_s19 }
  0x4c   : > { %p3135_p4 = pnand %p3133_p3, %p3633_p11  ;;  %p3141_p12 = scmp.lt.s32.totalorder %s3139_s26, %s3132_s16 }
  0x4d   : > { %s559_s17 = scalar_lea.hbm %s4593_s6, %s2797_s15 }
  0x4e   : > { %p3136_p5 = pneg %p3135_p4  ;;  %p3142_p13 = por %p3141_p12, %p3140_p8 }
  0x50   : > { %p3143_p10 = pnand %p3142_p13, %p3136_p5 }
  0x52   : > { %3146 = shalt.err (!%p3143_p10)
}
  0x53   : > { %2987 = dma.hbm_to_vmem [thread:$0]  (!%p3617_p9), %s559_s17, 32, %s562_s14, %s4569_s30  }
  0x54   : > { %s3673_s4 = sshll.u32 %s3469_s29, 4  ;;  %s592_s28 = scalar_lea.vmem [#allocation13], %s3615_s20 }
  0x55   : > { %s599_s15 = sshll.u32 %s592_s28, 4  ;;  %s597_s26 = scalar_lea.hbm %s4553_s8, %s3673_s4  ;;  %s600_s15 = int_to_ptr.vmem [resolvable:$true] %s599_s15 }
  0x56   : > { %s4570_s13 = scalar_lea.sflag [#allocation14], %s3622_s22  ;;  %s3160_s23 = scalar_lea.vmem %s600_s15, 16 }
  0x57   : > { %p3161_p0 = scmp.ne.s32.totalorder %s600_s15, %s3160_s23  ;;  %s3478_s16 = smov [#allocation13]  }
  0x58   : > { %s3165_s18 = sshll.u32 %s3478_s16, 4  ;;  %s3166_s18 = int_to_ptr.vmem [resolvable:$false] %s3165_s18 }
  0x59   : > { %p3163_p1 = pnand %p3161_p0, %p3633_p11  ;;  %s3167_s17 = scalar_lea.vmem %s3166_s18, 32 }
  0x5a   : > { %p3168_p3 = scmp.lt.s32.totalorder %s600_s15, %s3166_s18  ;;  %p3169_p4 = scmp.lt.s32.totalorder %s3167_s17, %s3160_s23 }
  0x5b   : > { %p3164_p2 = pneg %p3163_p1 }
  0x5c   : > { %p3170_p5 = por %p3169_p4, %p3168_p3 }
  0x5e   : > { %p3171_p8 = pnand %p3170_p5, %p3164_p2 }
  0x60   : > { %3174 = shalt.err (!%p3171_p8)
}
  0x61   : > { %2993 = dma.hbm_to_vmem [thread:$0]  (!%p3617_p9), %s597_s26, 16, %s600_s15, %s4570_s13  }
  0x62   : > { %s635_s28 = scalar_lea.hbm %s4555_s10, %s3673_s4  ;;  %s630_s25 = scalar_lea.vmem [#allocation16], %s3615_s20 }
  0x63   : > { %s637_s24 = sshll.u32 %s630_s25, 4  ;;  %s4572_s23 = scalar_lea.sflag [#allocation17], %s3622_s22  ;;  %s638_s24 = int_to_ptr.vmem [resolvable:$true] %s637_s24 }
  0x64   : > { %s3188_s16 = scalar_lea.vmem %s638_s24, 16  ;;  %s3479_s18 = smov [#allocation16]  }
  0x65   : > { %p3189_p12 = scmp.ne.s32.totalorder %s638_s24, %s3188_s16  ;;  %s3193_s17 = sshll.u32 %s3479_s18, 4  ;;  %s3194_s17 = int_to_ptr.vmem [resolvable:$false] %s3193_s17 }
  0x66   : > { %s3195_s30 = scalar_lea.vmem %s3194_s17, 32  ;;  %p3196_p0 = scmp.lt.s32.totalorder %s638_s24, %s3194_s17 }
  0x67   : > { %p3191_p13 = pnand %p3189_p12, %p3633_p11  ;;  %p3197_p1 = scmp.lt.s32.totalorder %s3195_s30, %s3188_s16 }
  0x69   : > { %p3192_p10 = pneg %p3191_p13  ;;  %p3198_p2 = por %p3197_p1, %p3196_p0 }
  0x6b   : > { %p3199_p3 = pnand %p3198_p2, %p3192_p10 }
  0x6d   : > { %3202 = shalt.err (!%p3199_p3)
}
  0x6e   : > { %2999 = dma.hbm_to_vmem [thread:$0]  (!%p3617_p9), %s635_s28, 16, %s638_s24, %s4572_s23  }
  0x6f   : > { %s2942_s15 = smul.u32 2560, %s3615_s20  ;;  %s2756_s14 = sshll.u32 %s3615_s20, 10 }
  0x70   : > { %s2943_s26 = smul.u32 40960, %s3469_s29  ;;  %s4594_s1 = sld [smem:[#allocation36_spill]] }
  0x71   : > { %s452_s16 = scalar_lea.vmem [#allocation2], %s2942_s15  ;;  %s449_s17 = scalar_lea.sflag [#allocation3], %s3615_s20 }
  0x72   : > { %s459_s18 = sshll.u32 %s452_s16, 4  ;;  %s3480_s2 = smov [#allocation2]   ;;  %s460_s18 = int_to_ptr.vmem [resolvable:$true] %s459_s18 }
  0x73   : > { %s3216_s13 = scalar_lea.vmem %s460_s18, 40960  ;;  %s3221_s6 = sshll.u32 %s3480_s2, 4  ;;  %s3222_s6 = int_to_ptr.vmem [resolvable:$false] %s3221_s6 }
  0x74   : > { %p3217_p4 = scmp.ne.s32.totalorder %s460_s18, %s3216_s13  ;;  %s3223_s28 = scalar_lea.vmem %s3222_s6, 81920 }
  0x75   : > { %p3224_p12 = scmp.lt.s32.totalorder %s460_s18, %s3222_s6  ;;  %p3225_p13 = scmp.lt.s32.totalorder %s3223_s28, %s3216_s13 }
  0x76   : > { %s458_s30 = scalar_lea.hbm %s4594_s1, %s2943_s26  ;;  %p3219_p5 = pnand %p3217_p4, %p3633_p11 }
  0x77   : > { %p3226_p10 = por %p3225_p13, %p3224_p12 }
  0x78   : > { %p3220_p8 = pneg %p3219_p5 }
  0x7a   : > { %p3227_p0 = pnand %p3226_p10, %p3220_p8 }
  0x7c   : > { %3230 = shalt.err (!%p3227_p0)
}
  0x7d   : > { %s3481_s24 = smov 512   ;;  %s3482_s15 = smov 32  }
  0x7e   : > { %2972 = dma.hbm_to_vmem [thread:$0]  (!%p3617_p9), %s458_s30, 40960, %s460_s18, %s449_s17, %s3481_s24, %s3481_s24, %s3482_s15  }
  0x7f   : > { %s2796_s26 = sshll.u32 %s3469_s29, 14  ;;  %s492_s19 = scalar_lea.vmem [#allocation6], %s2756_s14 }
  0x80   : > { %s499_s25 = sshll.u32 %s492_s19, 4  ;;  %s4595_s3 = sld [smem:[#allocation38_spill]]  ;;  %s500_s25 = int_to_ptr.vmem [resolvable:$true] %s499_s25 }
  0x81   : > { %s3244_s6 = scalar_lea.vmem %s500_s25, 16384  ;;  %s3483_s13 = smov [#allocation6]  }
  0x82   : > { %p3245_p1 = scmp.ne.s32.totalorder %s500_s25, %s3244_s6  ;;  %s3249_s28 = sshll.u32 %s3483_s13, 4  ;;  %s3250_s28 = int_to_ptr.vmem [resolvable:$false] %s3249_s28 }
  0x83   : > { %s3251_s1 = scalar_lea.vmem %s3250_s28, 32768  ;;  %p3252_p4 = scmp.lt.s32.totalorder %s500_s25, %s3250_s28 }
  0x84   : > { %p3247_p2 = pnand %p3245_p1, %p3633_p11  ;;  %p3253_p5 = scmp.lt.s32.totalorder %s3251_s1, %s3244_s6 }
  0x86   : > { %s498_s2 = scalar_lea.hbm %s4595_s3, %s2796_s26  ;;  %p3248_p3 = pneg %p3247_p2 }
  0x87   : > { %p3254_p8 = por %p3253_p5, %p3252_p4 }
  0x89   : > { %p3255_p12 = pnand %p3254_p8, %p3248_p3 }
  0x8b   : > { %3258 = shalt.err (!%p3255_p12)
}
  0x8c   : > { %s3484_s14 = smov 256   ;;  %s3485_s23 = smov 16  }
  0x8d   : > { %s4596_s30 = scalar_lea.sflag [#allocation5], %s3622_s22  ;;  %s2762_s18 = sshll.u32 %s3615_s20, 9 }
  0x8e   : > { %2978 = dma.hbm_to_vmem [thread:$0]  (!%p3617_p9), %s498_s2, 16384, %s500_s25, %s4596_s30, %s3484_s14, %s3484_s14, %s3485_s23  }
  0x8f   : > { %s2798_s17 = sshll.u32 %s3469_s29, 13  ;;  %s532_s26 = scalar_lea.vmem [#allocation9], %s2762_s18 }
  0x90   : > { %s538_s1 = scalar_lea.hbm %s4550_s5, %s2798_s17  ;;  %s539_s19 = sshll.u32 %s532_s26, 4  ;;  %s540_s19 = int_to_ptr.vmem [resolvable:$true] %s539_s19 }
  0x91   : > { %s2768_s16 = sshll.u32 %s3615_s20, 8  ;;  %s3272_s6 = scalar_lea.vmem %s540_s19, 8192 }
  0x92   : > { %p3273_p13 = scmp.ne.s32.totalorder %s540_s19, %s3272_s6  ;;  %s3486_s13 = smov [#allocation9]  }
  0x93   : > { %s3277_s28 = sshll.u32 %s3486_s13, 4  ;;  %s3278_s28 = int_to_ptr.vmem [resolvable:$false] %s3277_s28 }
  0x94   : > { %p3275_p10 = pnand %p3273_p13, %p3633_p11  ;;  %s3279_s3 = scalar_lea.vmem %s3278_s28, 16384 }
  0x95   : > { %p3280_p1 = scmp.lt.s32.totalorder %s540_s19, %s3278_s28  ;;  %p3281_p2 = scmp.lt.s32.totalorder %s3279_s3, %s3272_s6 }
  0x96   : > { %p3276_p0 = pneg %p3275_p10 }
  0x97   : > { %p3282_p3 = por %p3281_p2, %p3280_p1 }
  0x99   : > { %p3283_p4 = pnand %p3282_p3, %p3276_p0 }
  0x9b   : > { %3286 = shalt.err (!%p3283_p4)
}
  0x9c   : > { %s4597_s25 = scalar_lea.sflag [#allocation8], %s3622_s22  ;;  %s2800_s2 = sshll.u32 %s3469_s29, 12 }
  0x9d   : > { %2984 = dma.hbm_to_vmem [thread:$0]  (!%p3617_p9), %s538_s1, 8192, %s540_s19, %s4597_s25, %s3484_s14, %s3484_s14, %s3485_s23  }
  0x9e   : > { %s572_s30 = scalar_lea.vmem [#allocation12], %s2768_s16  ;;  %s578_s15 = scalar_lea.hbm %s4552_s7, %s2800_s2 }
  0x9f   : > { %s579_s18 = sshll.u32 %s572_s30, 4  ;;  %s3487_s3 = smov [#allocation12]   ;;  %s580_s18 = int_to_ptr.vmem [resolvable:$true] %s579_s18 }
  0xa0   : > { %s3300_s26 = scalar_lea.vmem %s580_s18, 4096  ;;  %s3305_s6 = sshll.u32 %s3487_s3, 4  ;;  %s3306_s6 = int_to_ptr.vmem [resolvable:$false] %s3305_s6 }
  0xa1   : > { %p3301_p5 = scmp.ne.s32.totalorder %s580_s18, %s3300_s26  ;;  %s3307_s13 = scalar_lea.vmem %s3306_s6, 8192 }
  0xa2   : > { %p3308_p13 = scmp.lt.s32.totalorder %s580_s18, %s3306_s6  ;;  %p3309_p10 = scmp.lt.s32.totalorder %s3307_s13, %s3300_s26 }
  0xa3   : > { %p3303_p8 = pnand %p3301_p5, %p3633_p11 }
  0xa4   : > { %p3310_p0 = por %p3309_p10, %p3308_p13 }
  0xa5   : > { %p3304_p12 = pneg %p3303_p8 }
  0xa7   : > { %p3311_p1 = pnand %p3310_p0, %p3304_p12 }
  0xa9   : > { %3314 = shalt.err (!%p3311_p1)
}
  0xaa   : > { %s3488_s14 = smov 128   ;;  %s3489_s23 = smov 8  }
  0xab   : > { %s4598_s1 = scalar_lea.sflag [#allocation11], %s3622_s22  ;;  %s2772_s19 = sshll.u32 %s3615_s20, 7 }
  0xac   : > { %2990 = dma.hbm_to_vmem [thread:$0]  (!%p3617_p9), %s578_s15, 4096, %s580_s18, %s4598_s1, %s3488_s14, %s3488_s14, %s3489_s23  }
  0xad   : > { %s2801_s16 = sshll.u32 %s3469_s29, 11  ;;  %s610_s30 = scalar_lea.vmem [#allocation15], %s2772_s19 }
  0xae   : > { %s616_s2 = scalar_lea.hbm %s4554_s9, %s2801_s16  ;;  %s617_s17 = sshll.u32 %s610_s30, 4  ;;  %s618_s17 = int_to_ptr.vmem [resolvable:$true] %s617_s17 }
  0xaf   : > { %s3753_s3 = scalar_lea.hbm %s4556_s11, %s2801_s16  ;;  %s3328_s6 = scalar_lea.vmem %s618_s17, 2048 }
  0xb0   : > { %p3329_p2 = scmp.ne.s32.totalorder %s618_s17, %s3328_s6  ;;  %s3490_s18 = smov [#allocation15]  }
  0xb1   : > { %s3333_s15 = sshll.u32 %s3490_s18, 4  ;;  %s3334_s15 = int_to_ptr.vmem [resolvable:$false] %s3333_s15 }
  0xb2   : > { %p3331_p3 = pnand %p3329_p2, %p3633_p11  ;;  %s3335_s13 = scalar_lea.vmem %s3334_s15, 4096 }
  0xb3   : > { %p3336_p5 = scmp.lt.s32.totalorder %s618_s17, %s3334_s15  ;;  %p3337_p8 = scmp.lt.s32.totalorder %s3335_s13, %s3328_s6 }
  0xb4   : > { %p3332_p4 = pneg %p3331_p3 }
  0xb5   : > { %p3338_p12 = por %p3337_p8, %p3336_p5 }
  0xb7   : > { %p3339_p13 = pnand %p3338_p12, %p3332_p4 }
  0xb9   : > { %3342 = shalt.err (!%p3339_p13)
}
  0xba   : > { %s4599_s1 = scalar_lea.sflag [#allocation14], %s3622_s22  ;;  %s648_s16 = scalar_lea.vmem [#allocation18], %s2772_s19 }
  0xbb   : > { %2996 = dma.hbm_to_vmem [thread:$0]  (!%p3617_p9), %s616_s2, 2048, %s618_s17, %s4599_s1, %s3488_s14, %s3488_s14, %s3489_s23  }
  0xbc   : > { %s655_s28 = sshll.u32 %s648_s16, 4  ;;  %s3491_s30 = smov [#allocation18]   ;;  %s656_s28 = int_to_ptr.vmem [resolvable:$true] %s655_s28 }
  0xbd   : > { %s3356_s25 = scalar_lea.vmem %s656_s28, 2048  ;;  %s3361_s24 = sshll.u32 %s3491_s30, 4  ;;  %s3362_s24 = int_to_ptr.vmem [resolvable:$false] %s3361_s24 }
  0xbe   : > { %p3357_p10 = scmp.ne.s32.totalorder %s656_s28, %s3356_s25  ;;  %s3363_s26 = scalar_lea.vmem %s3362_s24, 4096 }
  0xbf   : > { %p3364_p2 = scmp.lt.s32.totalorder %s656_s28, %s3362_s24  ;;  %p3365_p3 = scmp.lt.s32.totalorder %s3363_s26, %s3356_s25 }
  0xc0   : > { %p3359_p0 = pnand %p3357_p10, %p3633_p11 }
  0xc1   : > { %p3366_p4 = por %p3365_p3, %p3364_p2 }
  0xc2   : > { %p3360_p1 = pneg %p3359_p0 }
  0xc4   : > { %p3367_p5 = pnand %p3366_p4, %p3360_p1 }
  0xc6   : > { %3370 = shalt.err (!%p3367_p5)
}
  0xc7   : > { %s4600_s19 = scalar_lea.sflag [#allocation17], %s3622_s22  ;;  %s673_s6 = scalar_lea.hbm %s4557_s12, %s3673_s4 }
  0xc8   : > { %3002 = dma.hbm_to_vmem [thread:$0]  (!%p3617_p9), %s3753_s3, 2048, %s656_s28, %s4600_s19, %s3488_s14, %s3488_s14, %s3489_s23  }
  0xc9   : > { %s668_s18 = scalar_lea.vmem [#allocation19], %s3615_s20  ;;  %s666_s13 = scalar_lea.sflag [#allocation20], %s3615_s20 }
  0xca   : > { %s675_s15 = sshll.u32 %s668_s18, 4  ;;  %s3492_s22 = smov [#allocation19]   ;;  %s676_s15 = int_to_ptr.vmem [resolvable:$true] %s675_s15 }
  0xcb   : > { %s3384_s1 = scalar_lea.vmem %s676_s15, 16  ;;  %s3389_s16 = sshll.u32 %s3492_s22, 4  ;;  %s3390_s16 = int_to_ptr.vmem [resolvable:$false] %s3389_s16 }
  0xcc   : > { %p3385_p8 = scmp.ne.s32.totalorder %s676_s15, %s3384_s1  ;;  %s3391_s25 = scalar_lea.vmem %s3390_s16, 32 }
  0xcd   : > { %p3392_p10 = scmp.lt.s32.totalorder %s676_s15, %s3390_s16  ;;  %p3393_p0 = scmp.lt.s32.totalorder %s3391_s25, %s3384_s1 }
  0xce   : > { %p3387_p12 = pnand %p3385_p8, %p3633_p11 }
  0xcf   : > { %p3394_p1 = por %p3393_p0, %p3392_p10 }
  0xd0   : > { %p3388_p13 = pneg %p3387_p12 }
  0xd2   : > { %p3395_p2 = pnand %p3394_p1, %p3388_p13 }
  0xd4   : > { %3398 = shalt.err (!%p3395_p2)
}
  0xd5   : > { %3005 = dma.hbm_to_vmem [thread:$0]  (!%p3617_p9), %s673_s6, 16, %s676_s15, %s666_s13  }
  0xd6   : > { %684 = sbr.rel (%p3648_p6) target bundleno = 1627 (0x65b), region = 72  ;;  %s4601_s20 = sld [smem:[#allocation28_spill]] (!%p3648_p6) }
  0xdc   : > { %s3787_s27 = sand.u32 1, %s4601_s20  }
  0xdd   : > { %s2944_s14 = smul.u32 2560, %s3787_s27  ;;  %s687_s23 = scalar_lea.sflag [#allocation3], %s3787_s27 }
  0xdf   : > { %s3791_s3 = scalar_lea.vmem [#allocation2], %s2944_s14 }
  0xe0   : > { %3424 = dma.done.wait (%p3606_p7), %s687_s23, 40960  }
  0xe1   : > { %3426 = vsyncadd (%p3606_p7), %s687_s23, 4294926336  ;;  %s4603_s21 = sld [smem:[#allocation31_spill]]  ;;  %s2781_s30 = sshll.u32 %s3787_s27, 2 }
  0xe2   : > { %s3803_s26 = scalar_lea.vmem [#allocation4], %s2781_s30 }
  0xe7   : > { %s4604_s28 = sadd.s32 4294967295, %s4603_s21  }
  0xe8   : > { %s3799_s0 = sand.u32 1, %s4604_s28  }
  0xe9   : > { %s696_s24 = scalar_lea.sflag [#allocation5], %s3799_s0 }
  0xea   : > { %3428 = dma.done.wait (%p3606_p7), %s696_s24, 16448  }
  0xeb   : > { %3430 = vsyncadd (%p3606_p7), %s696_s24, 4294950848  ;;  %s2782_s19 = sshll.u32 %s3787_s27, 10  ;;  %s2783_s2 = sshll.u32 %s3787_s27, 1 }
  0xec   : > { %s3811_s17 = scalar_lea.vmem [#allocation6], %s2782_s19  ;;  %s714_s6 = scalar_lea.sflag [#allocation8], %s3799_s0 }
  0xed   : > { %s3814_s18 = scalar_lea.vmem [#allocation7], %s2783_s2 }
  0xee   : > { %3432 = dma.done.wait (%p3606_p7), %s714_s6, 8224  }
  0xef   : > { %3434 = vsyncadd (%p3606_p7), %s714_s6, 4294959072  ;;  %s2784_s15 = sshll.u32 %s3787_s27, 9  ;;  %s732_s1 = scalar_lea.sflag [#allocation11], %s3799_s0 }
  0xf0   : > { %s3821_s13 = scalar_lea.vmem [#allocation9], %s2784_s15  ;;  %s3824_s22 = scalar_lea.vmem [#allocation10], %s2783_s2 }
  0xf1   : > { %3436 = dma.done.wait (%p3606_p7), %s732_s1, 4128  }
  0xf2   : > { %3438 = vsyncadd (%p3606_p7), %s732_s1, 4294963168  ;;  %s2786_s16 = sshll.u32 %s3787_s27, 8  ;;  %s750_s20 = scalar_lea.sflag [#allocation14], %s3799_s0 }
  0xf3   : > { %s3831_s25 = scalar_lea.vmem [#allocation12], %s2786_s16  ;;  %s752_s14 = scalar_lea.vmem [#allocation13], %s3787_s27 }
  0xf4   : > { %3440 = dma.done.wait (%p3606_p7), %s750_s20, 2064  }
  0xf5   : > { %3442 = vsyncadd (%p3606_p7), %s750_s20, 4294965232  ;;  %s2787_s23 = sshll.u32 %s3787_s27, 7  ;;  %s767_s28 = scalar_lea.sflag [#allocation17], %s3799_s0 }
  0xf6   : > { %s3840_s21 = scalar_lea.vmem [#allocation15], %s2787_s23  ;;  %s769_s30 = scalar_lea.vmem [#allocation16], %s3787_s27 }
  0xf7   : > { %3444 = dma.done.wait (%p3606_p7), %s767_s28, 2064  }
  0xf8   : > { %3446 = vsyncadd (%p3606_p7), %s767_s28, 4294965232  ;;  %s3848_s24 = scalar_lea.vmem [#allocation18], %s2787_s23  ;;  %s784_s19 = scalar_lea.sflag [#allocation20], %s3787_s27 }
  0xf9   : > { %s786_s2 = scalar_lea.vmem [#allocation19], %s3787_s27 }
  0xfa   : > { %3448 = dma.done.wait (%p3606_p7), %s784_s19, 16  }
  0xfb   : > { %3450 = vsyncadd (%p3606_p7), %s784_s19, 4294967280  ;;  %v966_v0 = vld [vmem:[%s3791_s3 + $0x1e8] sm:$0xff]  ;;  %v965_v2 = vld [vmem:[%s3791_s3 + $0x1e0] sm:$0xff]  ;;  %s4605_s6 = sld [smem:[#allocation35_spill]]  ;;  %vm3494_vm0 = vmmov 0  }
  0xfc   : > { %v1094_v1 = vld [vmem:[%s3791_s3 + $0x5e8] sm:$0xff]  ;;  %1247 = vmatprep.subr.mxu0 %v966_v0  ;;  %v1093_v3 = vld [vmem:[%s3791_s3 + $0x5e0] sm:$0xff] }
  0xfd   : > { %1318 = vmatprep.subr.mxu1 %v1094_v1  ;;  %v962_v4 = vld [vmem:[%s3791_s3 + $0x1c8] sm:$0xff]  ;;  %1248 = vmatpush1.msra.mxu0 %v965_v2  ;;  %v961_v6 = vld [vmem:[%s3791_s3 + $0x1c0] sm:$0xff] }
  0xfe   : > { %v1090_v5 = vld [vmem:[%s3791_s3 + $0x5c8] sm:$0xff]  ;;  %1319 = vmatpush1.msra.mxu1 %v1093_v3  ;;  %v1089_v7 = vld [vmem:[%s3791_s3 + $0x5c0] sm:$0xff]  ;;  %1249 = vmatprep.subr.mxu0 %v962_v4 }
  0xff   : > { %v958_v8 = vld [vmem:[%s3791_s3 + $0x1a8] sm:$0xff]  ;;  %1320 = vmatprep.subr.mxu1 %v1090_v5  ;;  %v957_v10 = vld [vmem:[%s3791_s3 + $0x1a0] sm:$0xff]  ;;  %1250 = vmatpush1.msra.mxu0 %v961_v6 }
 0x100   : > { %v1086_v9 = vld [vmem:[%s3791_s3 + $0x5a8] sm:$0xff]  ;;  %v1085_v11 = vld [vmem:[%s3791_s3 + $0x5a0] sm:$0xff]  ;;  %1321 = vmatpush1.msra.mxu1 %v1089_v7  ;;  %1251 = vmatprep.subr.mxu0 %v958_v8 }
 0x101   : > { %v954_v12 = vld [vmem:[%s3791_s3 + $0x188] sm:$0xff]  ;;  %1322 = vmatprep.subr.mxu1 %v1086_v9  ;;  %v953_v14 = vld [vmem:[%s3791_s3 + $0x180] sm:$0xff]  ;;  %1252 = vmatpush1.msra.mxu0 %v957_v10 }
 0x102   : > { %v1082_v13 = vld [vmem:[%s3791_s3 + $0x588] sm:$0xff]  ;;  %v1081_v15 = vld [vmem:[%s3791_s3 + $0x580] sm:$0xff]  ;;  %1323 = vmatpush1.msra.mxu1 %v1085_v11  ;;  %1253 = vmatprep.subr.mxu0 %v954_v12 }
 0x103   : > { %v950_v16 = vld [vmem:[%s3791_s3 + $0x168] sm:$0xff]  ;;  %1324 = vmatprep.subr.mxu1 %v1082_v13  ;;  %v949_v18 = vld [vmem:[%s3791_s3 + $0x160] sm:$0xff]  ;;  %1254 = vmatpush1.msra.mxu0 %v953_v14 }
 0x104   : > { %v1078_v17 = vld [vmem:[%s3791_s3 + $0x568] sm:$0xff]  ;;  %v1077_v19 = vld [vmem:[%s3791_s3 + $0x560] sm:$0xff]  ;;  %1325 = vmatpush1.msra.mxu1 %v1081_v15  ;;  %1255 = vmatprep.subr.mxu0 %v950_v16 }
 0x105   : > { %v946_v20 = vld [vmem:[%s3791_s3 + $0x148] sm:$0xff]  ;;  %1326 = vmatprep.subr.mxu1 %v1078_v17  ;;  %v945_v22 = vld [vmem:[%s3791_s3 + $0x140] sm:$0xff]  ;;  %1256 = vmatpush1.msra.mxu0 %v949_v18 }
 0x106   : > { %v1074_v21 = vld [vmem:[%s3791_s3 + $0x548] sm:$0xff]  ;;  %v1073_v23 = vld [vmem:[%s3791_s3 + $0x540] sm:$0xff]  ;;  %1327 = vmatpush1.msra.mxu1 %v1077_v19  ;;  %1257 = vmatprep.subr.mxu0 %v946_v20 }
 0x107   : > { %v942_v24 = vld [vmem:[%s3791_s3 + $0x128] sm:$0xff]  ;;  %1328 = vmatprep.subr.mxu1 %v1074_v21  ;;  %v941_v26 = vld [vmem:[%s3791_s3 + $0x120] sm:$0xff]  ;;  %1258 = vmatpush1.msra.mxu0 %v945_v22 }
 0x108   : > { %v1070_v25 = vld [vmem:[%s3791_s3 + $0x528] sm:$0xff]  ;;  %v1069_v27 = vld [vmem:[%s3791_s3 + $0x520] sm:$0xff]  ;;  %1329 = vmatpush1.msra.mxu1 %v1073_v23  ;;  %1259 = vmatprep.subr.mxu0 %v942_v24 }
 0x109   : > { %v938_v28 = vld [vmem:[%s3791_s3 + $0x108] sm:$0xff]  ;;  %1330 = vmatprep.subr.mxu1 %v1070_v25  ;;  %v937_v30 = vld [vmem:[%s3791_s3 + $0x100] sm:$0xff]  ;;  %1260 = vmatpush1.msra.mxu0 %v941_v26 }
 0x10a   : > { %v1066_v29 = vld [vmem:[%s3791_s3 + $0x508] sm:$0xff]  ;;  %v1065_v31 = vld [vmem:[%s3791_s3 + $0x500] sm:$0xff]  ;;  %1331 = vmatpush1.msra.mxu1 %v1069_v27  ;;  %1261 = vmatprep.subr.mxu0 %v938_v28 }
 0x10b   : > { %v934_v32 = vld [vmem:[%s3791_s3 + $0xe8] sm:$0xff]  ;;  %1332 = vmatprep.subr.mxu1 %v1066_v29  ;;  %v933_v34 = vld [vmem:[%s3791_s3 + $0xe0] sm:$0xff]  ;;  %1262 = vmatpush1.msra.mxu0 %v937_v30 }
 0x10c   : > { %v1062_v33 = vld [vmem:[%s3791_s3 + $0x4e8] sm:$0xff]  ;;  %v1061_v35 = vld [vmem:[%s3791_s3 + $0x4e0] sm:$0xff]  ;;  %1333 = vmatpush1.msra.mxu1 %v1065_v31  ;;  %1263 = vmatprep.subr.mxu0 %v934_v32 }
 0x10d   : > { %v930_v36 = vld [vmem:[%s3791_s3 + $0xc8] sm:$0xff]  ;;  %1334 = vmatprep.subr.mxu1 %v1062_v33  ;;  %v929_v38 = vld [vmem:[%s3791_s3 + $0xc0] sm:$0xff]  ;;  %1264 = vmatpush1.msra.mxu0 %v933_v34 }
 0x10e   : > { %v1058_v37 = vld [vmem:[%s3791_s3 + $0x4c8] sm:$0xff]  ;;  %v1057_v39 = vld [vmem:[%s3791_s3 + $0x4c0] sm:$0xff]  ;;  %1335 = vmatpush1.msra.mxu1 %v1061_v35  ;;  %1265 = vmatprep.subr.mxu0 %v930_v36 }
 0x10f   : > { %v926_v40 = vld [vmem:[%s3791_s3 + $0xa8] sm:$0xff]  ;;  %1336 = vmatprep.subr.mxu1 %v1058_v37  ;;  %v925_v42 = vld [vmem:[%s3791_s3 + $0xa0] sm:$0xff]  ;;  %1266 = vmatpush1.msra.mxu0 %v929_v38 }
 0x110   : > { %v1054_v41 = vld [vmem:[%s3791_s3 + $0x4a8] sm:$0xff]  ;;  %v1053_v43 = vld [vmem:[%s3791_s3 + $0x4a0] sm:$0xff]  ;;  %1337 = vmatpush1.msra.mxu1 %v1057_v39  ;;  %1267 = vmatprep.subr.mxu0 %v926_v40 }
 0x111   : > { %v922_v44 = vld [vmem:[%s3791_s3 + $0x88] sm:$0xff]  ;;  %1338 = vmatprep.subr.mxu1 %v1054_v41  ;;  %v921_v46 = vld [vmem:[%s3791_s3 + $0x80] sm:$0xff]  ;;  %1268 = vmatpush1.msra.mxu0 %v925_v42 }
 0x112   : > { %v1050_v45 = vld [vmem:[%s3791_s3 + $0x488] sm:$0xff]  ;;  %v1049_v47 = vld [vmem:[%s3791_s3 + $0x480] sm:$0xff]  ;;  %1339 = vmatpush1.msra.mxu1 %v1053_v43  ;;  %1269 = vmatprep.subr.mxu0 %v922_v44 }
 0x113   : > { %v918_v48 = vld [vmem:[%s3791_s3 + $0x68] sm:$0xff]  ;;  %1340 = vmatprep.subr.mxu1 %v1050_v45  ;;  %v917_v50 = vld [vmem:[%s3791_s3 + $0x60] sm:$0xff]  ;;  %1270 = vmatpush1.msra.mxu0 %v921_v46 }
 0x114   : > { %v1046_v49 = vld [vmem:[%s3791_s3 + $0x468] sm:$0xff]  ;;  %v1045_v51 = vld [vmem:[%s3791_s3 + $0x460] sm:$0xff]  ;;  %1341 = vmatpush1.msra.mxu1 %v1049_v47  ;;  %1271 = vmatprep.subr.mxu0 %v918_v48 }
 0x115   : > { %v914_v52 = vld [vmem:[%s3791_s3 + $0x48] sm:$0xff]  ;;  %1342 = vmatprep.subr.mxu1 %v1046_v49  ;;  %v913_v54 = vld [vmem:[%s3791_s3 + $0x40] sm:$0xff]  ;;  %1272 = vmatpush1.msra.mxu0 %v917_v50 }
 0x116   : > { %v1042_v53 = vld [vmem:[%s3791_s3 + $0x448] sm:$0xff]  ;;  %v1041_v55 = vld [vmem:[%s3791_s3 + $0x440] sm:$0xff]  ;;  %1343 = vmatpush1.msra.mxu1 %v1045_v51  ;;  %1273 = vmatprep.subr.mxu0 %v914_v52 }
 0x117   : > { %v910_v56 = vld [vmem:[%s3791_s3 + $0x28] sm:$0xff]  ;;  %1344 = vmatprep.subr.mxu1 %v1042_v53  ;;  %v909_v58 = vld [vmem:[%s3791_s3 + $0x20] sm:$0xff]  ;;  %1274 = vmatpush1.msra.mxu0 %v913_v54 }
 0x118   : > { %v1038_v57 = vld [vmem:[%s3791_s3 + $0x428] sm:$0xff]  ;;  %v1037_v59 = vld [vmem:[%s3791_s3 + $0x420] sm:$0xff]  ;;  %1345 = vmatpush1.msra.mxu1 %v1041_v55  ;;  %1275 = vmatprep.subr.mxu0 %v910_v56 }
 0x119   : > { %v906_v60 = vld [vmem:[%s3791_s3 + $0x8] sm:$0xff]  ;;  %1346 = vmatprep.subr.mxu1 %v1038_v57  ;;  %v905_v62 = vld [vmem:[%s3791_s3] sm:$0xff]  ;;  %1276 = vmatpush1.msra.mxu0 %v909_v58 }
 0x11a   : > { %v1034_v61 = vld [vmem:[%s3791_s3 + $0x408] sm:$0xff]  ;;  %v1033_v63 = vld [vmem:[%s3791_s3 + $0x400] sm:$0xff]  ;;  %1347 = vmatpush1.msra.mxu1 %v1037_v59  ;;  %1277 = vmatprep.subr.mxu0 %v906_v60 }
 0x11b   : > { %v1030_v0 = vld [vmem:[%s3791_s3 + $0x3e8] sm:$0xff]  ;;  %1348 = vmatprep.subr.mxu1 %v1034_v61  ;;  %v1029_v2 = vld [vmem:[%s3791_s3 + $0x3e0] sm:$0xff]  ;;  %1278 = vmatpush1.msra.mxu0 %v905_v62 }
 0x11c   : > { %v1158_v1 = vld [vmem:[%s3791_s3 + $0x7e8] sm:$0xff]  ;;  %v1157_v3 = vld [vmem:[%s3791_s3 + $0x7e0] sm:$0xff]  ;;  %1349 = vmatpush1.msra.mxu1 %v1033_v63  ;;  %1279 = vmatprep.subr.mxu0 %v1030_v0 }
 0x11d   : > { %v1026_v4 = vld [vmem:[%s3791_s3 + $0x3c8] sm:$0xff]  ;;  %1350 = vmatprep.subr.mxu1 %v1158_v1  ;;  %v1025_v6 = vld [vmem:[%s3791_s3 + $0x3c0] sm:$0xff]  ;;  %1280 = vmatpush2.msra.mxu0 %v1029_v2  ;;  %v3997_v2 = vld [vmem:[%s4605_s6 + $0x18] sm:$0xff] }
 0x11e   : > { %v1154_v5 = vld [vmem:[%s3791_s3 + $0x7c8] sm:$0xff]  ;;  %v1153_v7 = vld [vmem:[%s3791_s3 + $0x7c0] sm:$0xff]  ;;  %1351 = vmatpush2.msra.mxu1 %v1157_v3  ;;  %1281 = vmatprep.subr.mxu0 %v1026_v4  ;;  %v968_v4 = vld [vmem:[%s3791_s3 + $0x1f8] sm:$0xff] }
 0x11f   : > { %v1022_v8 = vld [vmem:[%s3791_s3 + $0x3a8] sm:$0xff]  ;;  %1352 = vmatprep.subr.mxu1 %v1154_v5  ;;  %v1021_v10 = vld [vmem:[%s3791_s3 + $0x3a0] sm:$0xff]  ;;  %1282 = vmatpush2.msra.mxu0 %v1025_v6  ;;  %v4005_v5 = vld [vmem:[%s4605_s6 + $0x10] sm:$0xff] }
 0x120   : > { %v1150_v9 = vld [vmem:[%s3791_s3 + $0x7a8] sm:$0xff]  ;;  %v1149_v11 = vld [vmem:[%s3791_s3 + $0x7a0] sm:$0xff]  ;;  %1353 = vmatpush2.msra.mxu1 %v1153_v7  ;;  %1283 = vmatprep.subr.mxu0 %v1022_v8  ;;  %v967_v7 = vld [vmem:[%s3791_s3 + $0x1f0] sm:$0xff] }
 0x121   : > { %v1018_v12 = vld [vmem:[%s3791_s3 + $0x388] sm:$0xff]  ;;  %1354 = vmatprep.subr.mxu1 %v1150_v9  ;;  %v1017_v14 = vld [vmem:[%s3791_s3 + $0x380] sm:$0xff]  ;;  %1284 = vmatpush2.msra.mxu0 %v1021_v10  ;;  %v964_v9 = vld [vmem:[%s3791_s3 + $0x1d8] sm:$0xff] }
 0x122   : > { %v1146_v13 = vld [vmem:[%s3791_s3 + $0x788] sm:$0xff]  ;;  %v1145_v15 = vld [vmem:[%s3791_s3 + $0x780] sm:$0xff]  ;;  %1355 = vmatpush2.msra.mxu1 %v1149_v11  ;;  %1285 = vmatprep.subr.mxu0 %v1018_v12  ;;  %v963_v11 = vld [vmem:[%s3791_s3 + $0x1d0] sm:$0xff] }
 0x123   : > { %v1014_v16 = vld [vmem:[%s3791_s3 + $0x368] sm:$0xff]  ;;  %1356 = vmatprep.subr.mxu1 %v1146_v13  ;;  %v1013_v18 = vld [vmem:[%s3791_s3 + $0x360] sm:$0xff]  ;;  %1286 = vmatpush2.msra.mxu0 %v1017_v14  ;;  %v960_v13 = vld [vmem:[%s3791_s3 + $0x1b8] sm:$0xff] }
 0x124   : > { %v1142_v17 = vld [vmem:[%s3791_s3 + $0x768] sm:$0xff]  ;;  %v1141_v19 = vld [vmem:[%s3791_s3 + $0x760] sm:$0xff]  ;;  %1357 = vmatpush2.msra.mxu1 %v1145_v15  ;;  %1287 = vmatprep.subr.mxu0 %v1014_v16  ;;  %v959_v15 = vld [vmem:[%s3791_s3 + $0x1b0] sm:$0xff] }
 0x125   : > { %v1010_v20 = vld [vmem:[%s3791_s3 + $0x348] sm:$0xff]  ;;  %1358 = vmatprep.subr.mxu1 %v1142_v17  ;;  %v1009_v22 = vld [vmem:[%s3791_s3 + $0x340] sm:$0xff]  ;;  %1288 = vmatpush2.msra.mxu0 %v1013_v18  ;;  %v956_v17 = vld [vmem:[%s3791_s3 + $0x198] sm:$0xff] }
 0x126   : > { %v1138_v21 = vld [vmem:[%s3791_s3 + $0x748] sm:$0xff]  ;;  %v1137_v23 = vld [vmem:[%s3791_s3 + $0x740] sm:$0xff]  ;;  %1359 = vmatpush2.msra.mxu1 %v1141_v19  ;;  %1289 = vmatprep.subr.mxu0 %v1010_v20  ;;  %v955_v19 = vld [vmem:[%s3791_s3 + $0x190] sm:$0xff] }
 0x127   : > { %v1006_v24 = vld [vmem:[%s3791_s3 + $0x328] sm:$0xff]  ;;  %1360 = vmatprep.subr.mxu1 %v1138_v21  ;;  %v1005_v26 = vld [vmem:[%s3791_s3 + $0x320] sm:$0xff]  ;;  %1290 = vmatpush2.msra.mxu0 %v1009_v22  ;;  %v952_v21 = vld [vmem:[%s3791_s3 + $0x178] sm:$0xff] }
 0x128   : > { %v1134_v25 = vld [vmem:[%s3791_s3 + $0x728] sm:$0xff]  ;;  %v1133_v27 = vld [vmem:[%s3791_s3 + $0x720] sm:$0xff]  ;;  %1361 = vmatpush2.msra.mxu1 %v1137_v23  ;;  %1291 = vmatprep.subr.mxu0 %v1006_v24  ;;  %v951_v23 = vld [vmem:[%s3791_s3 + $0x170] sm:$0xff] }
 0x129   : > { %v1002_v28 = vld [vmem:[%s3791_s3 + $0x308] sm:$0xff]  ;;  %1362 = vmatprep.subr.mxu1 %v1134_v25  ;;  %v1001_v30 = vld [vmem:[%s3791_s3 + $0x300] sm:$0xff]  ;;  %1292 = vmatpush2.msra.mxu0 %v1005_v26  ;;  %v948_v25 = vld [vmem:[%s3791_s3 + $0x158] sm:$0xff] }
 0x12a   : > { %v1130_v29 = vld [vmem:[%s3791_s3 + $0x708] sm:$0xff]  ;;  %v1129_v31 = vld [vmem:[%s3791_s3 + $0x700] sm:$0xff]  ;;  %1363 = vmatpush2.msra.mxu1 %v1133_v27  ;;  %1293 = vmatprep.subr.mxu0 %v1002_v28  ;;  %v947_v27 = vld [vmem:[%s3791_s3 + $0x150] sm:$0xff] }
 0x12b   : > { %v998_v32 = vld [vmem:[%s3791_s3 + $0x2e8] sm:$0xff]  ;;  %1364 = vmatprep.subr.mxu1 %v1130_v29  ;;  %v997_v34 = vld [vmem:[%s3791_s3 + $0x2e0] sm:$0xff]  ;;  %1294 = vmatpush2.msra.mxu0 %v1001_v30  ;;  %v944_v29 = vld [vmem:[%s3791_s3 + $0x138] sm:$0xff] }
 0x12c   : > { %v1126_v33 = vld [vmem:[%s3791_s3 + $0x6e8] sm:$0xff]  ;;  %v1125_v35 = vld [vmem:[%s3791_s3 + $0x6e0] sm:$0xff]  ;;  %1365 = vmatpush2.msra.mxu1 %v1129_v31  ;;  %1295 = vmatprep.subr.mxu0 %v998_v32  ;;  %v943_v31 = vld [vmem:[%s3791_s3 + $0x130] sm:$0xff] }
 0x12d   : > { %v994_v36 = vld [vmem:[%s3791_s3 + $0x2c8] sm:$0xff]  ;;  %1366 = vmatprep.subr.mxu1 %v1126_v33  ;;  %v993_v38 = vld [vmem:[%s3791_s3 + $0x2c0] sm:$0xff]  ;;  %1296 = vmatpush2.msra.mxu0 %v997_v34  ;;  %v940_v33 = vld [vmem:[%s3791_s3 + $0x118] sm:$0xff] }
 0x12e   : > { %v1122_v37 = vld [vmem:[%s3791_s3 + $0x6c8] sm:$0xff]  ;;  %v1121_v39 = vld [vmem:[%s3791_s3 + $0x6c0] sm:$0xff]  ;;  %1367 = vmatpush2.msra.mxu1 %v1125_v35  ;;  %1297 = vmatprep.subr.mxu0 %v994_v36  ;;  %v939_v35 = vld [vmem:[%s3791_s3 + $0x110] sm:$0xff] }
 0x12f   : > { %v990_v40 = vld [vmem:[%s3791_s3 + $0x2a8] sm:$0xff]  ;;  %1368 = vmatprep.subr.mxu1 %v1122_v37  ;;  %v989_v42 = vld [vmem:[%s3791_s3 + $0x2a0] sm:$0xff]  ;;  %1298 = vmatpush2.msra.mxu0 %v993_v38  ;;  %v936_v37 = vld [vmem:[%s3791_s3 + $0xf8] sm:$0xff] }
 0x130   : > { %v1118_v41 = vld [vmem:[%s3791_s3 + $0x6a8] sm:$0xff]  ;;  %v1117_v43 = vld [vmem:[%s3791_s3 + $0x6a0] sm:$0xff]  ;;  %1369 = vmatpush2.msra.mxu1 %v1121_v39  ;;  %1299 = vmatprep.subr.mxu0 %v990_v40  ;;  %v935_v39 = vld [vmem:[%s3791_s3 + $0xf0] sm:$0xff] }
 0x131   : > { %v986_v44 = vld [vmem:[%s3791_s3 + $0x288] sm:$0xff]  ;;  %1370 = vmatprep.subr.mxu1 %v1118_v41  ;;  %v985_v46 = vld [vmem:[%s3791_s3 + $0x280] sm:$0xff]  ;;  %1300 = vmatpush2.msra.mxu0 %v989_v42  ;;  %v932_v41 = vld [vmem:[%s3791_s3 + $0xd8] sm:$0xff] }
 0x132   : > { %v1114_v45 = vld [vmem:[%s3791_s3 + $0x688] sm:$0xff]  ;;  %v1113_v47 = vld [vmem:[%s3791_s3 + $0x680] sm:$0xff]  ;;  %1371 = vmatpush2.msra.mxu1 %v1117_v43  ;;  %1301 = vmatprep.subr.mxu0 %v986_v44  ;;  %v931_v43 = vld [vmem:[%s3791_s3 + $0xd0] sm:$0xff] }
 0x133   : > { %v982_v48 = vld [vmem:[%s3791_s3 + $0x268] sm:$0xff]  ;;  %1372 = vmatprep.subr.mxu1 %v1114_v45  ;;  %v981_v50 = vld [vmem:[%s3791_s3 + $0x260] sm:$0xff]  ;;  %1302 = vmatpush2.msra.mxu0 %v985_v46  ;;  %v928_v45 = vld [vmem:[%s3791_s3 + $0xb8] sm:$0xff] }
 0x134   : > { %v1110_v49 = vld [vmem:[%s3791_s3 + $0x668] sm:$0xff]  ;;  %v1109_v51 = vld [vmem:[%s3791_s3 + $0x660] sm:$0xff]  ;;  %1373 = vmatpush2.msra.mxu1 %v1113_v47  ;;  %1303 = vmatprep.subr.mxu0 %v982_v48  ;;  %v927_v47 = vld [vmem:[%s3791_s3 + $0xb0] sm:$0xff] }
 0x135   : > { %v978_v52 = vld [vmem:[%s3791_s3 + $0x248] sm:$0xff]  ;;  %1374 = vmatprep.subr.mxu1 %v1110_v49  ;;  %v977_v54 = vld [vmem:[%s3791_s3 + $0x240] sm:$0xff]  ;;  %1304 = vmatpush2.msra.mxu0 %v981_v50  ;;  %v924_v49 = vld [vmem:[%s3791_s3 + $0x98] sm:$0xff] }
 0x136   : > { %v1106_v53 = vld [vmem:[%s3791_s3 + $0x648] sm:$0xff]  ;;  %v1105_v55 = vld [vmem:[%s3791_s3 + $0x640] sm:$0xff]  ;;  %1375 = vmatpush2.msra.mxu1 %v1109_v51  ;;  %1305 = vmatprep.subr.mxu0 %v978_v52  ;;  %v923_v51 = vld [vmem:[%s3791_s3 + $0x90] sm:$0xff] }
 0x137   : > { %v974_v56 = vld [vmem:[%s3791_s3 + $0x228] sm:$0xff]  ;;  %1376 = vmatprep.subr.mxu1 %v1106_v53  ;;  %v973_v58 = vld [vmem:[%s3791_s3 + $0x220] sm:$0xff]  ;;  %1306 = vmatpush2.msra.mxu0 %v977_v54  ;;  %v920_v53 = vld [vmem:[%s3791_s3 + $0x78] sm:$0xff] }
 0x138   : > { %v1102_v57 = vld [vmem:[%s3791_s3 + $0x628] sm:$0xff]  ;;  %v1101_v59 = vld [vmem:[%s3791_s3 + $0x620] sm:$0xff]  ;;  %1377 = vmatpush2.msra.mxu1 %v1105_v55  ;;  %1307 = vmatprep.subr.mxu0 %v974_v56  ;;  %v919_v55 = vld [vmem:[%s3791_s3 + $0x70] sm:$0xff] }
 0x139   : > { %v970_v60 = vld [vmem:[%s3791_s3 + $0x208] sm:$0xff]  ;;  %1378 = vmatprep.subr.mxu1 %v1102_v57  ;;  %v969_v62 = vld [vmem:[%s3791_s3 + $0x200] sm:$0xff]  ;;  %1308 = vmatpush2.msra.mxu0 %v973_v58  ;;  %v916_v57 = vld [vmem:[%s3791_s3 + $0x58] sm:$0xff] }
 0x13a   : > { %v1098_v61 = vld [vmem:[%s3791_s3 + $0x608] sm:$0xff]  ;;  %1379 = vmatpush2.msra.mxu1 %v1101_v59  ;;  %v1097_v0 = vld [vmem:[%s3791_s3 + $0x600] sm:$0xff]  ;;  %1309 = vmatprep.subr.mxu0 %v970_v60  ;;  %v915_v59 = vld [vmem:[%s3791_s3 + $0x50] sm:$0xff] }
 0x13b   : > { %v3986_v63 = vld [vmem:[%s4605_s6 + $0x8] sm:$0xff]  ;;  %v3992_v1 = vld [vmem:[%s4605_s6] sm:$0xff]  ;;  %1380 = vmatprep.subr.mxu1 %v1098_v61  ;;  %1310 = vmatpush2.msra.mxu0 %v969_v62  ;;  %v912_v61 = vld [vmem:[%s3791_s3 + $0x38] sm:$0xff] }
 0x13c   : > { %v1222_v3 = vld [vmem:[%s3791_s3 + $0x9e8] sm:$0xff]  ;;  %1311 = vmatprep.mubr.f32.mxu0 %v3986_v63  ;;  %1381 = vmatpush2.msra.mxu1 %v1097_v0  ;;  %v1221_v6 = vld [vmem:[%s3791_s3 + $0x9e0] sm:$0xff]  ;;  %v911_v0 = vld [vmem:[%s3791_s3 + $0x30] sm:$0xff] }
 0x13d   : > { %1312 = vmatmul.mubr.f32.vlgmr.msra.gmra.mxu0 %v3992_v1  ;;  %1382 = vmatprep.mubr.f32.mxu1 %v3997_v2  ;;  %v1218_v8 = vld [vmem:[%s3791_s3 + $0x9c8] sm:$0xff]  ;;  %v1217_v10 = vld [vmem:[%s3791_s3 + $0x9c0] sm:$0xff] }
 0x13e   : > { %1389 = vmatprep.subr.mxu0 %v1222_v3  ;;  %1460 = vmatprep.subr.mxu1 %v968_v4  ;;  %v1214_v12 = vld [vmem:[%s3791_s3 + $0x9a8] sm:$0xff]  ;;  %v1213_v14 = vld [vmem:[%s3791_s3 + $0x9a0] sm:$0xff]  ;;  %v908_v4 = vld [vmem:[%s3791_s3 + $0x18] sm:$0xff] }
 0x13f   : > { %1383 = vmatmul.mubr.f32.vlgmr.msra.gmra.mxu1 %v4005_v5  ;;  %1390 = vmatpush1.msra.mxu0 %v1221_v6  ;;  %v1210_v16 = vld [vmem:[%s3791_s3 + $0x988] sm:$0xff]  ;;  %v1209_v18 = vld [vmem:[%s3791_s3 + $0x980] sm:$0xff] }
 0x140   : > { %1461 = vmatpush1.msra.mxu1 %v967_v7  ;;  %1391 = vmatprep.subr.mxu0 %v1218_v8  ;;  %v1206_v20 = vld [vmem:[%s3791_s3 + $0x968] sm:$0xff]  ;;  %v1205_v22 = vld [vmem:[%s3791_s3 + $0x960] sm:$0xff]  ;;  %v907_v7 = vld [vmem:[%s3791_s3 + $0x10] sm:$0xff] }
 0x141   : > { %1462 = vmatprep.subr.mxu1 %v964_v9  ;;  %1392 = vmatpush1.msra.mxu0 %v1217_v10  ;;  %v1202_v24 = vld [vmem:[%s3791_s3 + $0x948] sm:$0xff]  ;;  %v1201_v26 = vld [vmem:[%s3791_s3 + $0x940] sm:$0xff]  ;;  %v1032_v9 = vld [vmem:[%s3791_s3 + $0x3f8] sm:$0xff] }
 0x142   : > { %1463 = vmatpush1.msra.mxu1 %v963_v11  ;;  %1393 = vmatprep.subr.mxu0 %v1214_v12  ;;  %v1198_v28 = vld [vmem:[%s3791_s3 + $0x928] sm:$0xff]  ;;  %v1197_v30 = vld [vmem:[%s3791_s3 + $0x920] sm:$0xff]  ;;  %v1096_v10 = vld [vmem:[%s3791_s3 + $0x5f8] sm:$0xff]  ;;  %v3493_v11 = vmov 0.0  }
 0x143   : > { %1464 = vmatprep.subr.mxu1 %v960_v13  ;;  %1394 = vmatpush1.msra.mxu0 %v1213_v14  ;;  %v1194_v32 = vld [vmem:[%s3791_s3 + $0x908] sm:$0xff]  ;;  %v1193_v34 = vld [vmem:[%s3791_s3 + $0x900] sm:$0xff]  ;;  %v1031_v12 = vld [vmem:[%s3791_s3 + $0x3f0] sm:$0xff] }
 0x144   : > { %1465 = vmatpush1.msra.mxu1 %v959_v15  ;;  %1395 = vmatprep.subr.mxu0 %v1210_v16  ;;  %v1190_v36 = vld [vmem:[%s3791_s3 + $0x8e8] sm:$0xff]  ;;  %v1189_v38 = vld [vmem:[%s3791_s3 + $0x8e0] sm:$0xff]  ;;  %v1095_v13 = vld [vmem:[%s3791_s3 + $0x5f0] sm:$0xff] }
 0x145   : > { %1466 = vmatprep.subr.mxu1 %v956_v17  ;;  %1396 = vmatpush1.msra.mxu0 %v1209_v18  ;;  %v1186_v40 = vld [vmem:[%s3791_s3 + $0x8c8] sm:$0xff]  ;;  %v1185_v42 = vld [vmem:[%s3791_s3 + $0x8c0] sm:$0xff]  ;;  %v1028_v14 = vld [vmem:[%s3791_s3 + $0x3d8] sm:$0xff] }
 0x146   : > { %1467 = vmatpush1.msra.mxu1 %v955_v19  ;;  %1397 = vmatprep.subr.mxu0 %v1206_v20  ;;  %v1182_v44 = vld [vmem:[%s3791_s3 + $0x8a8] sm:$0xff]  ;;  %v1181_v46 = vld [vmem:[%s3791_s3 + $0x8a0] sm:$0xff]  ;;  %v1092_v15 = vld [vmem:[%s3791_s3 + $0x5d8] sm:$0xff] }
 0x147   : > { %1468 = vmatprep.subr.mxu1 %v952_v21  ;;  %1398 = vmatpush1.msra.mxu0 %v1205_v22  ;;  %v1178_v48 = vld [vmem:[%s3791_s3 + $0x888] sm:$0xff]  ;;  %v1177_v50 = vld [vmem:[%s3791_s3 + $0x880] sm:$0xff]  ;;  %v1027_v16 = vld [vmem:[%s3791_s3 + $0x3d0] sm:$0xff] }
 0x148   : > { %1469 = vmatpush1.msra.mxu1 %v951_v23  ;;  %1399 = vmatprep.subr.mxu0 %v1202_v24  ;;  %v1174_v52 = vld [vmem:[%s3791_s3 + $0x868] sm:$0xff]  ;;  %v1173_v54 = vld [vmem:[%s3791_s3 + $0x860] sm:$0xff]  ;;  %v1091_v17 = vld [vmem:[%s3791_s3 + $0x5d0] sm:$0xff] }
 0x149   : > { %1470 = vmatprep.subr.mxu1 %v948_v25  ;;  %1400 = vmatpush1.msra.mxu0 %v1201_v26  ;;  %v1170_v56 = vld [vmem:[%s3791_s3 + $0x848] sm:$0xff]  ;;  %v1169_v58 = vld [vmem:[%s3791_s3 + $0x840] sm:$0xff]  ;;  %v1024_v18 = vld [vmem:[%s3791_s3 + $0x3b8] sm:$0xff] }
 0x14a   : > { %1471 = vmatpush1.msra.mxu1 %v947_v27  ;;  %1401 = vmatprep.subr.mxu0 %v1198_v28  ;;  %v1166_v60 = vld [vmem:[%s3791_s3 + $0x828] sm:$0xff]  ;;  %v1165_v62 = vld [vmem:[%s3791_s3 + $0x820] sm:$0xff]  ;;  %v1088_v19 = vld [vmem:[%s3791_s3 + $0x5b8] sm:$0xff] }
 0x14b   : > { %1472 = vmatprep.subr.mxu1 %v944_v29  ;;  %1402 = vmatpush1.msra.mxu0 %v1197_v30  ;;  %v1162_v3 = vld [vmem:[%s3791_s3 + $0x808] sm:$0xff]  ;;  %v1161_v6 = vld [vmem:[%s3791_s3 + $0x800] sm:$0xff]  ;;  %v1023_v20 = vld [vmem:[%s3791_s3 + $0x3b0] sm:$0xff] }
 0x14c   : > { %1473 = vmatpush1.msra.mxu1 %v943_v31  ;;  %1403 = vmatprep.subr.mxu0 %v1194_v32  ;;  %v4075_v8 = vld [vmem:[%s4605_s6 + $0x20] sm:$0xff]  ;;  %v1087_v21 = vld [vmem:[%s3791_s3 + $0x5b0] sm:$0xff]  ;;  %v1020_v22 = vld [vmem:[%s3791_s3 + $0x398] sm:$0xff] }
 0x14d   : > { %1474 = vmatprep.subr.mxu1 %v940_v33  ;;  %1404 = vmatpush1.msra.mxu0 %v1193_v34  ;;  %v1084_v23 = vld [vmem:[%s3791_s3 + $0x598] sm:$0xff]  ;;  %v1019_v24 = vld [vmem:[%s3791_s3 + $0x390] sm:$0xff] }
 0x14e   : > { %1475 = vmatpush1.msra.mxu1 %v939_v35  ;;  %1405 = vmatprep.subr.mxu0 %v1190_v36  ;;  %v1083_v25 = vld [vmem:[%s3791_s3 + $0x590] sm:$0xff]  ;;  %v1016_v26 = vld [vmem:[%s3791_s3 + $0x378] sm:$0xff] }
 0x14f   : > { %1476 = vmatprep.subr.mxu1 %v936_v37  ;;  %1406 = vmatpush1.msra.mxu0 %v1189_v38  ;;  %v1080_v27 = vld [vmem:[%s3791_s3 + $0x578] sm:$0xff]  ;;  %v1015_v28 = vld [vmem:[%s3791_s3 + $0x370] sm:$0xff] }
 0x150   : > { %1477 = vmatpush1.msra.mxu1 %v935_v39  ;;  %1407 = vmatprep.subr.mxu0 %v1186_v40  ;;  %v1079_v29 = vld [vmem:[%s3791_s3 + $0x570] sm:$0xff]  ;;  %v1012_v30 = vld [vmem:[%s3791_s3 + $0x358] sm:$0xff] }
 0x151   : > { %1478 = vmatprep.subr.mxu1 %v932_v41  ;;  %1408 = vmatpush1.msra.mxu0 %v1185_v42  ;;  %v1076_v31 = vld [vmem:[%s3791_s3 + $0x558] sm:$0xff]  ;;  %v1011_v32 = vld [vmem:[%s3791_s3 + $0x350] sm:$0xff] }
 0x152   : > { %1479 = vmatpush1.msra.mxu1 %v931_v43  ;;  %1409 = vmatprep.subr.mxu0 %v1182_v44  ;;  %v1075_v33 = vld [vmem:[%s3791_s3 + $0x550] sm:$0xff]  ;;  %v1008_v34 = vld [vmem:[%s3791_s3 + $0x338] sm:$0xff] }
 0x153   : > { %1480 = vmatprep.subr.mxu1 %v928_v45  ;;  %1410 = vmatpush1.msra.mxu0 %v1181_v46  ;;  %v1072_v35 = vld [vmem:[%s3791_s3 + $0x538] sm:$0xff]  ;;  %v1007_v36 = vld [vmem:[%s3791_s3 + $0x330] sm:$0xff] }
 0x154   : > { %1481 = vmatpush1.msra.mxu1 %v927_v47  ;;  %1411 = vmatprep.subr.mxu0 %v1178_v48  ;;  %v1071_v37 = vld [vmem:[%s3791_s3 + $0x530] sm:$0xff]  ;;  %v1004_v38 = vld [vmem:[%s3791_s3 + $0x318] sm:$0xff] }
 0x155   : > { %1482 = vmatprep.subr.mxu1 %v924_v49  ;;  %1412 = vmatpush1.msra.mxu0 %v1177_v50  ;;  %v1068_v39 = vld [vmem:[%s3791_s3 + $0x518] sm:$0xff]  ;;  %v1003_v40 = vld [vmem:[%s3791_s3 + $0x310] sm:$0xff] }
 0x156   : > { %1483 = vmatpush1.msra.mxu1 %v923_v51  ;;  %1413 = vmatprep.subr.mxu0 %v1174_v52  ;;  %v1067_v41 = vld [vmem:[%s3791_s3 + $0x510] sm:$0xff]  ;;  %v1000_v42 = vld [vmem:[%s3791_s3 + $0x2f8] sm:$0xff] }
 0x157   : > { %1484 = vmatprep.subr.mxu1 %v920_v53  ;;  %1414 = vmatpush1.msra.mxu0 %v1173_v54  ;;  %v1064_v43 = vld [vmem:[%s3791_s3 + $0x4f8] sm:$0xff]  ;;  %v999_v44 = vld [vmem:[%s3791_s3 + $0x2f0] sm:$0xff] }
 0x158   : > { %1485 = vmatpush1.msra.mxu1 %v919_v55  ;;  %1415 = vmatprep.subr.mxu0 %v1170_v56  ;;  %v1063_v45 = vld [vmem:[%s3791_s3 + $0x4f0] sm:$0xff]  ;;  %v996_v46 = vld [vmem:[%s3791_s3 + $0x2d8] sm:$0xff] }
 0x159   : > { %1486 = vmatprep.subr.mxu1 %v916_v57  ;;  %1416 = vmatpush1.msra.mxu0 %v1169_v58  ;;  %v1060_v47 = vld [vmem:[%s3791_s3 + $0x4d8] sm:$0xff]  ;;  %v995_v48 = vld [vmem:[%s3791_s3 + $0x2d0] sm:$0xff] }
 0x15a   : > { %1487 = vmatpush1.msra.mxu1 %v915_v59  ;;  %1417 = vmatprep.subr.mxu0 %v1166_v60  ;;  %v1059_v49 = vld [vmem:[%s3791_s3 + $0x4d0] sm:$0xff]  ;;  %v992_v50 = vld [vmem:[%s3791_s3 + $0x2b8] sm:$0xff] }
 0x15b   : > { %1488 = vmatprep.subr.mxu1 %v912_v61  ;;  %1418 = vmatpush1.msra.mxu0 %v1165_v62  ;;  %v1056_v51 = vld [vmem:[%s3791_s3 + $0x4b8] sm:$0xff]  ;;  %v991_v52 = vld [vmem:[%s3791_s3 + $0x2b0] sm:$0xff] }
 0x15c   : > { %1489 = vmatpush1.msra.mxu1 %v911_v0  ;;  %1419 = vmatprep.subr.mxu0 %v1162_v3  ;;  %v1055_v53 = vld [vmem:[%s3791_s3 + $0x4b0] sm:$0xff]  ;;  %v988_v54 = vld [vmem:[%s3791_s3 + $0x298] sm:$0xff] }
 0x15d   : > { %1490 = vmatprep.subr.mxu1 %v908_v4  ;;  %1420 = vmatpush1.msra.mxu0 %v1161_v6  ;;  %v1052_v55 = vld [vmem:[%s3791_s3 + $0x498] sm:$0xff]  ;;  %v987_v56 = vld [vmem:[%s3791_s3 + $0x290] sm:$0xff] }
 0x15e   : > { %1453 = vmatprep.mubr.f32.mxu0 %v3493_v11  ;;  %1491 = vmatpush1.msra.mxu1 %v907_v7  ;;  %v1051_v57 = vld [vmem:[%s3791_s3 + $0x490] sm:$0xff]  ;;  %v984_v58 = vld [vmem:[%s3791_s3 + $0x278] sm:$0xff] }
 0x15f   : > { %1454 = vmatmul.mubr.f32.vlgmr.msra.gmra.mxu0 %v4075_v8  ;;  %1492 = vmatprep.subr.mxu1 %v1032_v9  ;;  %v1048_v59 = vld [vmem:[%s3791_s3 + $0x478] sm:$0xff]  ;;  %v983_v60 = vld [vmem:[%s3791_s3 + $0x270] sm:$0xff] }
 0x160   : > { %1531 = vmatprep.subr.mxu0 %v1096_v10  ;;  %1493 = vmatpush2.msra.mxu1 %v1031_v12  ;;  %v1047_v61 = vld [vmem:[%s3791_s3 + $0x470] sm:$0xff]  ;;  %v980_v62 = vld [vmem:[%s3791_s3 + $0x258] sm:$0xff] }
 0x161   : > { %1532 = vmatpush1.msra.mxu0 %v1095_v13  ;;  %1494 = vmatprep.subr.mxu1 %v1028_v14  ;;  %v1044_v0 = vld [vmem:[%s3791_s3 + $0x458] sm:$0xff]  ;;  %v979_v3 = vld [vmem:[%s3791_s3 + $0x250] sm:$0xff] }
 0x162   : > { %1533 = vmatprep.subr.mxu0 %v1092_v15  ;;  %1495 = vmatpush2.msra.mxu1 %v1027_v16  ;;  %v1043_v4 = vld [vmem:[%s3791_s3 + $0x450] sm:$0xff]  ;;  %v976_v6 = vld [vmem:[%s3791_s3 + $0x238] sm:$0xff] }
 0x163   : > { %1534 = vmatpush1.msra.mxu0 %v1091_v17  ;;  %1496 = vmatprep.subr.mxu1 %v1024_v18  ;;  %v1040_v7 = vld [vmem:[%s3791_s3 + $0x438] sm:$0xff]  ;;  %v975_v9 = vld [vmem:[%s3791_s3 + $0x230] sm:$0xff] }
 0x164   : > { %1535 = vmatprep.subr.mxu0 %v1088_v19  ;;  %1497 = vmatpush2.msra.mxu1 %v1023_v20  ;;  %v1039_v10 = vld [vmem:[%s3791_s3 + $0x430] sm:$0xff]  ;;  %v972_v12 = vld [vmem:[%s3791_s3 + $0x218] sm:$0xff] }
 0x165   : > { %1536 = vmatpush1.msra.mxu0 %v1087_v21  ;;  %1498 = vmatprep.subr.mxu1 %v1020_v22  ;;  %v1036_v13 = vld [vmem:[%s3791_s3 + $0x418] sm:$0xff]  ;;  %v971_v14 = vld [vmem:[%s3791_s3 + $0x210] sm:$0xff] }
 0x166   : > { %1537 = vmatprep.subr.mxu0 %v1084_v23  ;;  %1499 = vmatpush2.msra.mxu1 %v1019_v24  ;;  %v1035_v15 = vld [vmem:[%s3791_s3 + $0x410] sm:$0xff]  ;;  %v1160_v16 = vld [vmem:[%s3791_s3 + $0x7f8] sm:$0xff] }
 0x167   : > { %1538 = vmatpush1.msra.mxu0 %v1083_v25  ;;  %1500 = vmatprep.subr.mxu1 %v1016_v26  ;;  %v1224_v17 = vld [vmem:[%s3791_s3 + $0x9f8] sm:$0xff]  ;;  %v1159_v18 = vld [vmem:[%s3791_s3 + $0x7f0] sm:$0xff] }
 0x168   : > { %1539 = vmatprep.subr.mxu0 %v1080_v27  ;;  %1501 = vmatpush2.msra.mxu1 %v1015_v28  ;;  %v1223_v19 = vld [vmem:[%s3791_s3 + $0x9f0] sm:$0xff]  ;;  %v1156_v20 = vld [vmem:[%s3791_s3 + $0x7d8] sm:$0xff] }
 0x169   : > { %1540 = vmatpush1.msra.mxu0 %v1079_v29  ;;  %1502 = vmatprep.subr.mxu1 %v1012_v30  ;;  %v1220_v21 = vld [vmem:[%s3791_s3 + $0x9d8] sm:$0xff]  ;;  %v1155_v22 = vld [vmem:[%s3791_s3 + $0x7d0] sm:$0xff] }
 0x16a   : > { %1541 = vmatprep.subr.mxu0 %v1076_v31  ;;  %1503 = vmatpush2.msra.mxu1 %v1011_v32  ;;  %v1219_v23 = vld [vmem:[%s3791_s3 + $0x9d0] sm:$0xff]  ;;  %v1152_v24 = vld [vmem:[%s3791_s3 + $0x7b8] sm:$0xff] }
 0x16b   : > { %1542 = vmatpush1.msra.mxu0 %v1075_v33  ;;  %1504 = vmatprep.subr.mxu1 %v1008_v34  ;;  %v1216_v25 = vld [vmem:[%s3791_s3 + $0x9b8] sm:$0xff]  ;;  %v1215_v26 = vld [vmem:[%s3791_s3 + $0x9b0] sm:$0xff] }
 0x16c   : > { %1543 = vmatprep.subr.mxu0 %v1072_v35  ;;  %1505 = vmatpush2.msra.mxu1 %v1007_v36  ;;  %v1148_v27 = vld [vmem:[%s3791_s3 + $0x798] sm:$0xff]  ;;  %v1147_v28 = vld [vmem:[%s3791_s3 + $0x790] sm:$0xff] }
 0x16d   : > { %1544 = vmatpush1.msra.mxu0 %v1071_v37  ;;  %1506 = vmatprep.subr.mxu1 %v1004_v38  ;;  %v1211_v29 = vld [vmem:[%s3791_s3 + $0x990] sm:$0xff]  ;;  %v1144_v30 = vld [vmem:[%s3791_s3 + $0x778] sm:$0xff] }
 0x16e   : > { %1545 = vmatprep.subr.mxu0 %v1068_v39  ;;  %1507 = vmatpush2.msra.mxu1 %v1003_v40  ;;  %v1208_v31 = vld [vmem:[%s3791_s3 + $0x978] sm:$0xff]  ;;  %v1143_v32 = vld [vmem:[%s3791_s3 + $0x770] sm:$0xff] }
 0x16f   : > { %1546 = vmatpush1.msra.mxu0 %v1067_v41  ;;  %1508 = vmatprep.subr.mxu1 %v1000_v42  ;;  %v1207_v33 = vld [vmem:[%s3791_s3 + $0x970] sm:$0xff]  ;;  %v1140_v34 = vld [vmem:[%s3791_s3 + $0x758] sm:$0xff] }
 0x170   : > { %1547 = vmatprep.subr.mxu0 %v1064_v43  ;;  %1509 = vmatpush2.msra.mxu1 %v999_v44  ;;  %v1204_v35 = vld [vmem:[%s3791_s3 + $0x958] sm:$0xff]  ;;  %v1139_v36 = vld [vmem:[%s3791_s3 + $0x750] sm:$0xff] }
 0x171   : > { %1548 = vmatpush1.msra.mxu0 %v1063_v45  ;;  %1510 = vmatprep.subr.mxu1 %v996_v46  ;;  %v1203_v37 = vld [vmem:[%s3791_s3 + $0x950] sm:$0xff]  ;;  %v1136_v38 = vld [vmem:[%s3791_s3 + $0x738] sm:$0xff] }
 0x172   : > { %1549 = vmatprep.subr.mxu0 %v1060_v47  ;;  %1511 = vmatpush2.msra.mxu1 %v995_v48  ;;  %v1200_v39 = vld [vmem:[%s3791_s3 + $0x938] sm:$0xff]  ;;  %v1135_v40 = vld [vmem:[%s3791_s3 + $0x730] sm:$0xff] }
 0x173   : > { %1550 = vmatpush1.msra.mxu0 %v1059_v49  ;;  %1512 = vmatprep.subr.mxu1 %v992_v50  ;;  %v1199_v41 = vld [vmem:[%s3791_s3 + $0x930] sm:$0xff]  ;;  %v1132_v42 = vld [vmem:[%s3791_s3 + $0x718] sm:$0xff] }
 0x174   : > { %1551 = vmatprep.subr.mxu0 %v1056_v51  ;;  %1513 = vmatpush2.msra.mxu1 %v991_v52  ;;  %v1196_v43 = vld [vmem:[%s3791_s3 + $0x918] sm:$0xff]  ;;  %v1131_v44 = vld [vmem:[%s3791_s3 + $0x710] sm:$0xff] }
 0x175   : > { %1552 = vmatpush1.msra.mxu0 %v1055_v53  ;;  %1514 = vmatprep.subr.mxu1 %v988_v54  ;;  %v1195_v45 = vld [vmem:[%s3791_s3 + $0x910] sm:$0xff]  ;;  %v1128_v46 = vld [vmem:[%s3791_s3 + $0x6f8] sm:$0xff] }
 0x176   : > { %1553 = vmatprep.subr.mxu0 %v1052_v55  ;;  %1515 = vmatpush2.msra.mxu1 %v987_v56  ;;  %v1192_v47 = vld [vmem:[%s3791_s3 + $0x8f8] sm:$0xff]  ;;  %v1127_v48 = vld [vmem:[%s3791_s3 + $0x6f0] sm:$0xff] }
 0x177   : > { %1554 = vmatpush1.msra.mxu0 %v1051_v57  ;;  %1516 = vmatprep.subr.mxu1 %v984_v58  ;;  %v1191_v49 = vld [vmem:[%s3791_s3 + $0x8f0] sm:$0xff]  ;;  %v1124_v50 = vld [vmem:[%s3791_s3 + $0x6d8] sm:$0xff] }
 0x178   : > { %1555 = vmatprep.subr.mxu0 %v1048_v59  ;;  %1517 = vmatpush2.msra.mxu1 %v983_v60  ;;  %v1188_v51 = vld [vmem:[%s3791_s3 + $0x8d8] sm:$0xff]  ;;  %v1123_v52 = vld [vmem:[%s3791_s3 + $0x6d0] sm:$0xff] }
 0x179   : > { %1556 = vmatpush1.msra.mxu0 %v1047_v61  ;;  %1518 = vmatprep.subr.mxu1 %v980_v62  ;;  %v1187_v53 = vld [vmem:[%s3791_s3 + $0x8d0] sm:$0xff]  ;;  %v1120_v54 = vld [vmem:[%s3791_s3 + $0x6b8] sm:$0xff] }
 0x17a   : > { %1557 = vmatprep.subr.mxu0 %v1044_v0  ;;  %1519 = vmatpush2.msra.mxu1 %v979_v3  ;;  %v1184_v55 = vld [vmem:[%s3791_s3 + $0x8b8] sm:$0xff]  ;;  %v1119_v56 = vld [vmem:[%s3791_s3 + $0x6b0] sm:$0xff] }
 0x17b   : > { %1558 = vmatpush1.msra.mxu0 %v1043_v4  ;;  %1520 = vmatprep.subr.mxu1 %v976_v6  ;;  %v1183_v57 = vld [vmem:[%s3791_s3 + $0x8b0] sm:$0xff]  ;;  %v1116_v58 = vld [vmem:[%s3791_s3 + $0x698] sm:$0xff] }
 0x17c   : > { %1559 = vmatprep.subr.mxu0 %v1040_v7  ;;  %1521 = vmatpush2.msra.mxu1 %v975_v9  ;;  %v1180_v59 = vld [vmem:[%s3791_s3 + $0x898] sm:$0xff]  ;;  %v1115_v60 = vld [vmem:[%s3791_s3 + $0x690] sm:$0xff] }
 0x17d   : > { %1560 = vmatpush1.msra.mxu0 %v1039_v10  ;;  %1522 = vmatprep.subr.mxu1 %v972_v12  ;;  %v1179_v61 = vld [vmem:[%s3791_s3 + $0x890] sm:$0xff]  ;;  %v1112_v62 = vld [vmem:[%s3791_s3 + $0x678] sm:$0xff] }
 0x17e   : > { %1561 = vmatprep.subr.mxu0 %v1036_v13  ;;  %1523 = vmatpush2.msra.mxu1 %v971_v14  ;;  %v1176_v0 = vld [vmem:[%s3791_s3 + $0x878] sm:$0xff]  ;;  %v1111_v3 = vld [vmem:[%s3791_s3 + $0x670] sm:$0xff] }
 0x17f   : > { %1562 = vmatpush1.msra.mxu0 %v1035_v15  ;;  %1524 = vmatprep.mubr.f32.mxu1 %v3986_v63  ;;  %v1151_v63 = vld [vmem:[%s3791_s3 + $0x7b0] sm:$0xff]  ;;  %v1108_v6 = vld [vmem:[%s3791_s3 + $0x658] sm:$0xff] }
 0x180   : > { %1563 = vmatprep.subr.mxu0 %v1160_v16  ;;  %1602 = vmatprep.subr.mxu1 %v1224_v17  ;;  %v1175_v4 = vld [vmem:[%s3791_s3 + $0x870] sm:$0xff]  ;;  %v1172_v7 = vld [vmem:[%s3791_s3 + $0x858] sm:$0xff] }
 0x181   : > { %1525 = vmatmul.mubr.f32.vlgmr.msra.gmra.mxu1 %v3992_v1  ;;  %1564 = vmatpush2.msra.mxu0 %v1159_v18  ;;  %v1212_v1 = vld [vmem:[%s3791_s3 + $0x998] sm:$0xff]  ;;  %v1107_v9 = vld [vmem:[%s3791_s3 + $0x650] sm:$0xff] }
 0x182   : > { %1603 = vmatpush1.msra.mxu1 %v1223_v19  ;;  %1565 = vmatprep.subr.mxu0 %v1156_v20  ;;  %v1171_v10 = vld [vmem:[%s3791_s3 + $0x850] sm:$0xff]  ;;  %v1104_v12 = vld [vmem:[%s3791_s3 + $0x638] sm:$0xff]  ;;  %v1712_v20 = vld [vmem:[%s3811_s17 + $0xf8] sm:$0xff] }
 0x183   : > { %1604 = vmatprep.subr.mxu1 %v1220_v21  ;;  %1566 = vmatpush2.msra.mxu0 %v1155_v22  ;;  %v1168_v13 = vld [vmem:[%s3791_s3 + $0x838] sm:$0xff]  ;;  %v1103_v14 = vld [vmem:[%s3791_s3 + $0x630] sm:$0xff] }
 0x184   : > { %1605 = vmatpush1.msra.mxu1 %v1219_v23  ;;  %1567 = vmatprep.subr.mxu0 %v1152_v24  ;;  %v1167_v15 = vld [vmem:[%s3791_s3 + $0x830] sm:$0xff]  ;;  %v1100_v16 = vld [vmem:[%s3791_s3 + $0x618] sm:$0xff]  ;;  %v1709_v23 = vld [vmem:[%s3811_s17 + $0xe0] sm:$0xff] }
 0x185   : > { %1606 = vmatprep.subr.mxu1 %v1216_v25  ;;  %1568 = vmatpush2.msra.mxu0 %v1151_v63  ;;  %v1164_v17 = vld [vmem:[%s3791_s3 + $0x818] sm:$0xff]  ;;  %v1099_v18 = vld [vmem:[%s3791_s3 + $0x610] sm:$0xff] }
 0x186   : > { %1607 = vmatpush1.msra.mxu1 %v1215_v26  ;;  %1569 = vmatprep.subr.mxu0 %v1148_v27  ;;  %v1163_v19 = vld [vmem:[%s3791_s3 + $0x810] sm:$0xff]  ;;  %v1711_v21 = vld [vmem:[%s3811_s17 + $0xf0] sm:$0xff]  ;;  %v1776_v26 = vld [vmem:[%s3811_s17 + $0x2f8] sm:$0xff]  ;;  %s4606_s3 = sld [smem:[#allocation30_spill]] }
 0x187   : > { %1608 = vmatprep.subr.mxu1 %v1212_v1  ;;  %1570 = vmatpush2.msra.mxu0 %v1147_v28  ;;  %v1710_v22 = vld [vmem:[%s3811_s17 + $0xe8] sm:$0xff]  ;;  %v1707_v24 = vld [vmem:[%s3811_s17 + $0xd0] sm:$0xff] }
 0x188   : > { %1609 = vmatpush1.msra.mxu1 %v1211_v29  ;;  %1571 = vmatprep.subr.mxu0 %v1144_v30  ;;  %v1706_v25 = vld [vmem:[%s3811_s17 + $0xc8] sm:$0xff]  ;;  %v1703_v63 = vld [vmem:[%s3811_s17 + $0xb0] sm:$0xff]  ;;  %v1773_v29 = vld [vmem:[%s3811_s17 + $0x2e0] sm:$0xff] }
 0x189   : > { %1610 = vmatprep.subr.mxu1 %v1208_v31  ;;  %1572 = vmatpush2.msra.mxu0 %v1143_v32  ;;  %v1775_v27 = vld [vmem:[%s3811_s17 + $0x2f0] sm:$0xff]  ;;  %v1774_v1 = vld [vmem:[%s3811_s17 + $0x2e8] sm:$0xff]  ;;  %v1701_v30 = vld [vmem:[%s3811_s17 + $0xa0] sm:$0xff] }
 0x18a   : > { %1611 = vmatpush1.msra.mxu1 %v1207_v33  ;;  %1573 = vmatprep.subr.mxu0 %v1140_v34  ;;  %v1702_v28 = vld [vmem:[%s3811_s17 + $0xa8] sm:$0xff]  ;;  %v1772_v31 = vld [vmem:[%s3811_s17 + $0x2d8] sm:$0xff]  ;;  %v1771_v33 = vld [vmem:[%s3811_s17 + $0x2d0] sm:$0xff] }
 0x18b   : > { %1612 = vmatprep.subr.mxu1 %v1204_v35  ;;  %1574 = vmatpush2.msra.mxu0 %v1139_v36  ;;  %v1700_v32 = vld [vmem:[%s3811_s17 + $0x98] sm:$0xff]  ;;  %v1699_v34 = vld [vmem:[%s3811_s17 + $0x90] sm:$0xff]  ;;  %v1770_v35 = vld [vmem:[%s3811_s17 + $0x2c8] sm:$0xff] }
 0x18c   : > { %1613 = vmatpush1.msra.mxu1 %v1203_v37  ;;  %1575 = vmatprep.subr.mxu0 %v1136_v38  ;;  %v1698_v36 = vld [vmem:[%s3811_s17 + $0x88] sm:$0xff]  ;;  %v1769_v37 = vld [vmem:[%s3811_s17 + $0x2c0] sm:$0xff]  ;;  %p893_p7 = scmp.lt.s32.totalorder %s4606_s3, 1 }
 0x18d   : > { %1614 = vmatprep.subr.mxu1 %v1200_v39  ;;  %1576 = vmatpush2.msra.mxu0 %v1135_v40  ;;  %v1697_v38 = vld [vmem:[%s3811_s17 + $0x80] sm:$0xff]  ;;  %v1768_v39 = vld [vmem:[%s3811_s17 + $0x2b8] sm:$0xff] }
 0x18e   : > { %1615 = vmatpush1.msra.mxu1 %v1199_v41  ;;  %1577 = vmatprep.subr.mxu0 %v1132_v42  ;;  %v1696_v40 = vld [vmem:[%s3811_s17 + $0x78] sm:$0xff]  ;;  %v1767_v41 = vld [vmem:[%s3811_s17 + $0x2b0] sm:$0xff]  ;;  %s4618_s3 = smov (!%p893_p7, %s4606_s3), 1 }
 0x18f   : > { %1616 = vmatprep.subr.mxu1 %v1196_v43  ;;  %1578 = vmatpush2.msra.mxu0 %v1131_v44  ;;  %v1695_v42 = vld [vmem:[%s3811_s17 + $0x70] sm:$0xff]  ;;  %v1766_v43 = vld [vmem:[%s3811_s17 + $0x2a8] sm:$0xff] }
 0x190   : > { %1617 = vmatpush1.msra.mxu1 %v1195_v45  ;;  %1579 = vmatprep.subr.mxu0 %v1128_v46  ;;  %v1694_v44 = vld [vmem:[%s3811_s17 + $0x68] sm:$0xff]  ;;  %v1765_v45 = vld [vmem:[%s3811_s17 + $0x2a0] sm:$0xff] }
 0x191   : > { %1618 = vmatprep.subr.mxu1 %v1192_v47  ;;  %1580 = vmatpush2.msra.mxu0 %v1127_v48  ;;  %v1693_v46 = vld [vmem:[%s3811_s17 + $0x60] sm:$0xff]  ;;  %v1764_v47 = vld [vmem:[%s3811_s17 + $0x298] sm:$0xff] }
 0x192   : > { %1619 = vmatpush1.msra.mxu1 %v1191_v49  ;;  %1581 = vmatprep.subr.mxu0 %v1124_v50  ;;  %v1692_v48 = vld [vmem:[%s3811_s17 + $0x58] sm:$0xff]  ;;  %v1763_v49 = vld [vmem:[%s3811_s17 + $0x290] sm:$0xff] }
 0x193   : > { %1620 = vmatprep.subr.mxu1 %v1188_v51  ;;  %1582 = vmatpush2.msra.mxu0 %v1123_v52  ;;  %v1691_v50 = vld [vmem:[%s3811_s17 + $0x50] sm:$0xff]  ;;  %v1762_v51 = vld [vmem:[%s3811_s17 + $0x288] sm:$0xff] }
 0x194   : > { %1621 = vmatpush1.msra.mxu1 %v1187_v53  ;;  %1583 = vmatprep.subr.mxu0 %v1120_v54  ;;  %v1690_v52 = vld [vmem:[%s3811_s17 + $0x48] sm:$0xff]  ;;  %v1761_v53 = vld [vmem:[%s3811_s17 + $0x280] sm:$0xff] }
 0x195   : > { %1622 = vmatprep.subr.mxu1 %v1184_v55  ;;  %1584 = vmatpush2.msra.mxu0 %v1119_v56  ;;  %v1689_v54 = vld [vmem:[%s3811_s17 + $0x40] sm:$0xff]  ;;  %v1760_v55 = vld [vmem:[%s3811_s17 + $0x278] sm:$0xff] }
 0x196   : > { %1623 = vmatpush1.msra.mxu1 %v1183_v57  ;;  %1585 = vmatprep.subr.mxu0 %v1116_v58  ;;  %v1688_v56 = vld [vmem:[%s3811_s17 + $0x38] sm:$0xff]  ;;  %v1759_v57 = vld [vmem:[%s3811_s17 + $0x270] sm:$0xff] }
 0x197   : > { %1624 = vmatprep.subr.mxu1 %v1180_v59  ;;  %1586 = vmatpush2.msra.mxu0 %v1115_v60  ;;  %v1687_v58 = vld [vmem:[%s3811_s17 + $0x30] sm:$0xff]  ;;  %v1758_v59 = vld [vmem:[%s3811_s17 + $0x268] sm:$0xff] }
 0x198   : > { %1625 = vmatpush1.msra.mxu1 %v1179_v61  ;;  %1587 = vmatprep.subr.mxu0 %v1112_v62  ;;  %v1686_v60 = vld [vmem:[%s3811_s17 + $0x28] sm:$0xff]  ;;  %v1757_v61 = vld [vmem:[%s3811_s17 + $0x260] sm:$0xff] }
 0x199   : > { %1626 = vmatprep.subr.mxu1 %v1176_v0  ;;  %1588 = vmatpush2.msra.mxu0 %v1111_v3  ;;  %v1685_v62 = vld [vmem:[%s3811_s17 + $0x20] sm:$0xff]  ;;  %v1756_v0 = vld [vmem:[%s3811_s17 + $0x258] sm:$0xff] }
 0x19a   : > { %1627 = vmatpush1.msra.mxu1 %v1175_v4  ;;  %1589 = vmatprep.subr.mxu0 %v1108_v6  ;;  %v1684_v3 = vld [vmem:[%s3811_s17 + $0x18] sm:$0xff]  ;;  %v1683_v4 = vld [vmem:[%s3811_s17 + $0x10] sm:$0xff]  ;;  %v1682_v6 = vld [vmem:[%s3811_s17 + $0x8] sm:$0xff] }
 0x19b   : > { %1628 = vmatprep.subr.mxu1 %v1172_v7  ;;  %1590 = vmatpush2.msra.mxu0 %v1107_v9  ;;  %v1681_v7 = vld [vmem:[%s3811_s17] sm:$0xff]  ;;  %v1744_v9 = vld [vmem:[%s3811_s17 + $0x1f8] sm:$0xff] }
 0x19c   : > { %1629 = vmatpush1.msra.mxu1 %v1171_v10  ;;  %1591 = vmatprep.subr.mxu0 %v1104_v12  ;;  %v1743_v10 = vld [vmem:[%s3811_s17 + $0x1f0] sm:$0xff]  ;;  %v1742_v12 = vld [vmem:[%s3811_s17 + $0x1e8] sm:$0xff] }
 0x19d   : > { %1630 = vmatprep.subr.mxu1 %v1168_v13  ;;  %1592 = vmatpush2.msra.mxu0 %v1103_v14  ;;  %v1755_v13 = vld [vmem:[%s3811_s17 + $0x250] sm:$0xff]  ;;  %v1754_v14 = vld [vmem:[%s3811_s17 + $0x248] sm:$0xff] }
 0x19e   : > { %1631 = vmatpush1.msra.mxu1 %v1167_v15  ;;  %1593 = vmatprep.subr.mxu0 %v1100_v16  ;;  %v1741_v15 = vld [vmem:[%s3811_s17 + $0x1e0] sm:$0xff]  ;;  %v1740_v16 = vld [vmem:[%s3811_s17 + $0x1d8] sm:$0xff] }
 0x19f   : > { %1632 = vmatprep.subr.mxu1 %v1164_v17  ;;  %1594 = vmatpush2.msra.mxu0 %v1099_v18  ;;  %v1753_v17 = vld [vmem:[%s3811_s17 + $0x240] sm:$0xff]  ;;  %v1752_v18 = vld [vmem:[%s3811_s17 + $0x238] sm:$0xff] }
 0x1a0   : > { %1595 = vmatprep.mubr.f32.mxu0 %v3997_v2  ;;  %1633 = vmatpush1.msra.mxu1 %v1163_v19  ;;  %v1708_v2 = vld [vmem:[%s3811_s17 + $0xd8] sm:$0xff]  ;;  %v1751_v19 = vld [vmem:[%s3811_s17 + $0x230] sm:$0xff] }
 0x1a1   : > { %1666 = vmatprep.mubr.f32.mxu1 %v3493_v11  ;;  %1596 = vmatmul.mubr.f32.vlgmr.msra.gmra.mxu0 %v4005_v5  ;;  %v1705_v5 = vld [vmem:[%s3811_s17 + $0xc0] sm:$0xff] }
 0x1a2   : > { %1667 = vmatmul.mubr.f32.vlgmr.msra.gmra.mxu1 %v4075_v8  ;;  %1821 = vmatprep.subr.mxu0 %v1712_v20  ;;  %v1704_v8 = vld [vmem:[%s3811_s17 + $0xb8] sm:$0xff]  ;;  %v1739_v20 = vld [vmem:[%s3811_s17 + $0x1d0] sm:$0xff] }
 0x1a3   : > { %1822 = vmatpush1.msra.mxu0 %v1711_v21  ;;  %1892 = vmatprep.subr.mxu1 %v1776_v26  ;;  %v1750_v21 = vld [vmem:[%s3811_s17 + $0x228] sm:$0xff] }
 0x1a4   : > { %1823 = vmatprep.subr.mxu0 %v1710_v22  ;;  %1893 = vmatpush1.msra.mxu1 %v1775_v27  ;;  %v1738_v22 = vld [vmem:[%s3811_s17 + $0x1c8] sm:$0xff]  ;;  %v1745_v27 = vld [vmem:[%s3811_s17 + $0x200] sm:$0xff] }
 0x1a5   : > { %1824 = vmatpush1.msra.mxu0 %v1709_v23  ;;  %1894 = vmatprep.subr.mxu1 %v1774_v1  ;;  %v1749_v23 = vld [vmem:[%s3811_s17 + $0x220] sm:$0xff]  ;;  %v1734_v26 = vld [vmem:[%s3811_s17 + $0x1a8] sm:$0xff] }
 0x1a6   : > { %1825 = vmatprep.subr.mxu0 %v1708_v2  ;;  %1895 = vmatpush1.msra.mxu1 %v1773_v29  ;;  %v1737_v2 = vld [vmem:[%s3811_s17 + $0x1c0] sm:$0xff]  ;;  %v1732_v29 = vld [vmem:[%s3811_s17 + $0x198] sm:$0xff] }
 0x1a7   : > { %1826 = vmatpush1.msra.mxu0 %v1707_v24  ;;  %1896 = vmatprep.subr.mxu1 %v1772_v31  ;;  %v1748_v24 = vld [vmem:[%s3811_s17 + $0x218] sm:$0xff]  ;;  %v1733_v1 = vld [vmem:[%s3811_s17 + $0x1a0] sm:$0xff]  ;;  %v1731_v31 = vld [vmem:[%s3811_s17 + $0x190] sm:$0xff] }
 0x1a8   : > { %1827 = vmatprep.subr.mxu0 %v1706_v25  ;;  %1897 = vmatpush1.msra.mxu1 %v1771_v33  ;;  %v1736_v25 = vld [vmem:[%s3811_s17 + $0x1b8] sm:$0xff]  ;;  %v1730_v33 = vld [vmem:[%s3811_s17 + $0x188] sm:$0xff] }
 0x1a9   : > { %1828 = vmatpush1.msra.mxu0 %v1705_v5  ;;  %1898 = vmatprep.subr.mxu1 %v1770_v35  ;;  %v1747_v5 = vld [vmem:[%s3811_s17 + $0x210] sm:$0xff]  ;;  %v1729_v35 = vld [vmem:[%s3811_s17 + $0x180] sm:$0xff] }
 0x1aa   : > { %1829 = vmatprep.subr.mxu0 %v1704_v8  ;;  %1899 = vmatpush1.msra.mxu1 %v1769_v37  ;;  %v1735_v8 = vld [vmem:[%s3811_s17 + $0x1b0] sm:$0xff]  ;;  %v1728_v37 = vld [vmem:[%s3811_s17 + $0x178] sm:$0xff] }
 0x1ab   : > { %1830 = vmatpush1.msra.mxu0 %v1703_v63  ;;  %1900 = vmatprep.subr.mxu1 %v1768_v39  ;;  %v1746_v63 = vld [vmem:[%s3811_s17 + $0x208] sm:$0xff]  ;;  %v1727_v39 = vld [vmem:[%s3811_s17 + $0x170] sm:$0xff] }
 0x1ac   : > { %1831 = vmatprep.subr.mxu0 %v1702_v28  ;;  %1901 = vmatpush1.msra.mxu1 %v1767_v41  ;;  %v1808_v28 = vld [vmem:[%s3811_s17 + $0x3f8] sm:$0xff]  ;;  %v1726_v41 = vld [vmem:[%s3811_s17 + $0x168] sm:$0xff] }
 0x1ad   : > { %1832 = vmatpush1.msra.mxu0 %v1701_v30  ;;  %1902 = vmatprep.subr.mxu1 %v1766_v43  ;;  %v1807_v30 = vld [vmem:[%s3811_s17 + $0x3f0] sm:$0xff]  ;;  %v1725_v43 = vld [vmem:[%s3811_s17 + $0x160] sm:$0xff] }
 0x1ae   : > { %1833 = vmatprep.subr.mxu0 %v1700_v32  ;;  %1903 = vmatpush1.msra.mxu1 %v1765_v45  ;;  %v1806_v32 = vld [vmem:[%s3811_s17 + $0x3e8] sm:$0xff]  ;;  %v1724_v45 = vld [vmem:[%s3811_s17 + $0x158] sm:$0xff] }
 0x1af   : > { %1834 = vmatpush1.msra.mxu0 %v1699_v34  ;;  %1904 = vmatprep.subr.mxu1 %v1764_v47  ;;  %v1805_v34 = vld [vmem:[%s3811_s17 + $0x3e0] sm:$0xff]  ;;  %v1723_v47 = vld [vmem:[%s3811_s17 + $0x150] sm:$0xff] }
 0x1b0   : > { %1835 = vmatprep.subr.mxu0 %v1698_v36  ;;  %1905 = vmatpush1.msra.mxu1 %v1763_v49  ;;  %v1804_v36 = vld [vmem:[%s3811_s17 + $0x3d8] sm:$0xff]  ;;  %v1722_v49 = vld [vmem:[%s3811_s17 + $0x148] sm:$0xff] }
 0x1b1   : > { %1836 = vmatpush1.msra.mxu0 %v1697_v38  ;;  %1906 = vmatprep.subr.mxu1 %v1762_v51  ;;  %v1803_v38 = vld [vmem:[%s3811_s17 + $0x3d0] sm:$0xff]  ;;  %v1721_v51 = vld [vmem:[%s3811_s17 + $0x140] sm:$0xff] }
 0x1b2   : > { %1837 = vmatprep.subr.mxu0 %v1696_v40  ;;  %1907 = vmatpush1.msra.mxu1 %v1761_v53  ;;  %v1802_v40 = vld [vmem:[%s3811_s17 + $0x3c8] sm:$0xff]  ;;  %v1720_v53 = vld [vmem:[%s3811_s17 + $0x138] sm:$0xff] }
 0x1b3   : > { %1838 = vmatpush1.msra.mxu0 %v1695_v42  ;;  %1908 = vmatprep.subr.mxu1 %v1760_v55  ;;  %v1801_v42 = vld [vmem:[%s3811_s17 + $0x3c0] sm:$0xff]  ;;  %v1719_v55 = vld [vmem:[%s3811_s17 + $0x130] sm:$0xff] }
 0x1b4   : > { %1839 = vmatprep.subr.mxu0 %v1694_v44  ;;  %1909 = vmatpush1.msra.mxu1 %v1759_v57  ;;  %v1800_v44 = vld [vmem:[%s3811_s17 + $0x3b8] sm:$0xff]  ;;  %v1718_v57 = vld [vmem:[%s3811_s17 + $0x128] sm:$0xff] }
 0x1b5   : > { %1840 = vmatpush1.msra.mxu0 %v1693_v46  ;;  %1910 = vmatprep.subr.mxu1 %v1758_v59  ;;  %v1799_v46 = vld [vmem:[%s3811_s17 + $0x3b0] sm:$0xff]  ;;  %v1717_v59 = vld [vmem:[%s3811_s17 + $0x120] sm:$0xff] }
 0x1b6   : > { %1841 = vmatprep.subr.mxu0 %v1692_v48  ;;  %1911 = vmatpush1.msra.mxu1 %v1757_v61  ;;  %v1798_v48 = vld [vmem:[%s3811_s17 + $0x3a8] sm:$0xff]  ;;  %v1716_v61 = vld [vmem:[%s3811_s17 + $0x118] sm:$0xff] }
 0x1b7   : > { %1842 = vmatpush1.msra.mxu0 %v1691_v50  ;;  %1912 = vmatprep.subr.mxu1 %v1756_v0  ;;  %v1797_v50 = vld [vmem:[%s3811_s17 + $0x3a0] sm:$0xff]  ;;  %v1715_v0 = vld [vmem:[%s3811_s17 + $0x110] sm:$0xff] }
 0x1b8   : > { %1843 = vmatprep.subr.mxu0 %v1690_v52  ;;  %1913 = vmatpush1.msra.mxu1 %v1755_v13  ;;  %v1796_v52 = vld [vmem:[%s3811_s17 + $0x398] sm:$0xff]  ;;  %v1785_v13 = vld [vmem:[%s3811_s17 + $0x340] sm:$0xff] }
 0x1b9   : > { %1844 = vmatpush1.msra.mxu0 %v1689_v54  ;;  %1914 = vmatprep.subr.mxu1 %v1754_v14  ;;  %v1795_v54 = vld [vmem:[%s3811_s17 + $0x390] sm:$0xff]  ;;  %v1784_v14 = vld [vmem:[%s3811_s17 + $0x338] sm:$0xff] }
 0x1ba   : > { %1845 = vmatprep.subr.mxu0 %v1688_v56  ;;  %1915 = vmatpush1.msra.mxu1 %v1753_v17  ;;  %v1794_v56 = vld [vmem:[%s3811_s17 + $0x388] sm:$0xff]  ;;  %v1781_v17 = vld [vmem:[%s3811_s17 + $0x320] sm:$0xff] }
 0x1bb   : > { %1846 = vmatpush1.msra.mxu0 %v1687_v58  ;;  %1916 = vmatprep.subr.mxu1 %v1752_v18  ;;  %v1793_v58 = vld [vmem:[%s3811_s17 + $0x380] sm:$0xff]  ;;  %v1780_v18 = vld [vmem:[%s3811_s17 + $0x318] sm:$0xff] }
 0x1bc   : > { %1847 = vmatprep.subr.mxu0 %v1686_v60  ;;  %1917 = vmatpush1.msra.mxu1 %v1751_v19  ;;  %v1792_v60 = vld [vmem:[%s3811_s17 + $0x378] sm:$0xff]  ;;  %v1779_v19 = vld [vmem:[%s3811_s17 + $0x310] sm:$0xff] }
 0x1bd   : > { %1848 = vmatpush1.msra.mxu0 %v1685_v62  ;;  %1918 = vmatprep.subr.mxu1 %v1750_v21  ;;  %v1791_v62 = vld [vmem:[%s3811_s17 + $0x370] sm:$0xff]  ;;  %v1777_v21 = vld [vmem:[%s3811_s17 + $0x300] sm:$0xff] }
 0x1be   : > { %1849 = vmatprep.subr.mxu0 %v1684_v3  ;;  %1919 = vmatpush1.msra.mxu1 %v1749_v23  ;;  %v1790_v3 = vld [vmem:[%s3811_s17 + $0x368] sm:$0xff] }
 0x1bf   : > { %1850 = vmatpush1.msra.mxu0 %v1683_v4  ;;  %1920 = vmatprep.subr.mxu1 %v1748_v24  ;;  %v1714_v4 = vld [vmem:[%s3811_s17 + $0x108] sm:$0xff]  ;;  %v1225_v24 = vld [vmem:[%s3803_s26] sm:$0xf]  ;;  %s2789_s26 = sshll.u32 %s4618_s3, 3 }
 0x1c0   : > { %1851 = vmatprep.subr.mxu0 %v1682_v6  ;;  %1921 = vmatpush1.msra.mxu1 %v1747_v5  ;;  %v1789_v6 = vld [vmem:[%s3811_s17 + $0x360] sm:$0xff] }
 0x1c1   : > { %1852 = vmatpush1.msra.mxu0 %v1681_v7  ;;  %1922 = vmatprep.subr.mxu1 %v1746_v63  ;;  %v1713_v7 = vld [vmem:[%s3811_s17 + $0x100] sm:$0xff] }
 0x1c2   : > { %1853 = vmatprep.subr.mxu0 %v1744_v9  ;;  %1923 = vmatpush1.msra.mxu1 %v1745_v27  ;;  %v1788_v9 = vld [vmem:[%s3811_s17 + $0x358] sm:$0xff] }
 0x1c3   : > { %1854 = vmatpush2.msra.mxu0 %v1743_v10  ;;  %1924 = vmatprep.subr.mxu1 %v1808_v28  ;;  %v1787_v10 = vld [vmem:[%s3811_s17 + $0x350] sm:$0xff] }
 0x1c4   : > { %1855 = vmatprep.subr.mxu0 %v1742_v12  ;;  %1925 = vmatpush2.msra.mxu1 %v1807_v30  ;;  %v1786_v12 = vld [vmem:[%s3811_s17 + $0x348] sm:$0xff] }
 0x1c5   : > { %1856 = vmatpush2.msra.mxu0 %v1741_v15  ;;  %1926 = vmatprep.subr.mxu1 %v1806_v32  ;;  %v1783_v15 = vld [vmem:[%s3811_s17 + $0x330] sm:$0xff] }
 0x1c6   : > { %1857 = vmatprep.subr.mxu0 %v1740_v16  ;;  %1927 = vmatpush2.msra.mxu1 %v1805_v34  ;;  %v1782_v16 = vld [vmem:[%s3811_s17 + $0x328] sm:$0xff] }
 0x1c7   : > { %1858 = vmatpush2.msra.mxu0 %v1739_v20  ;;  %1928 = vmatprep.subr.mxu1 %v1804_v36  ;;  %v1778_v20 = vld [vmem:[%s3811_s17 + $0x308] sm:$0xff] }
 0x1c8   : > { %1859 = vmatprep.subr.mxu0 %v1738_v22  ;;  %1929 = vmatpush2.msra.mxu1 %v1803_v38  ;;  %v1227_v22 = vlaneseq }
 0x1c9   : > { %1860 = vmatpush2.msra.mxu0 %v1737_v2  ;;  %1930 = vmatprep.subr.mxu1 %v1802_v40 }
 0x1ca   : > { %1861 = vmatprep.subr.mxu0 %v1736_v25  ;;  %1931 = vmatpush2.msra.mxu1 %v1801_v42  ;;  %v1228_v23 = vshrl.u32 %v1227_v22, 7  ;;  %v1978_v22 = vld [vmem:[%s3821_s13 + $0x58] sm:$0xff] }
 0x1cb   : > { %1862 = vmatpush2.msra.mxu0 %v1735_v8  ;;  %1932 = vmatprep.subr.mxu1 %v1800_v44 }
 0x1cc   : > { %1863 = vmatprep.subr.mxu0 %v1734_v26  ;;  %1933 = vmatpush2.msra.mxu1 %v1799_v46  ;;  %v4341_v2 = vsub.s32 0, %v1228_v23  ;;  %v4344_v25 = vsub.s32 1, %v1228_v23  ;;  %v1237_v40 = vsub.s32 2, %v1228_v23 }
 0x1cd   : > { %1864 = vmatpush2.msra.mxu0 %v1733_v1  ;;  %1934 = vmatprep.subr.mxu1 %v1798_v48 }
 0x1ce   : > { %1865 = vmatprep.subr.mxu0 %v1732_v29  ;;  %1935 = vmatpush2.msra.mxu1 %v1797_v50  ;;  %v1230_v8 = vrot.slane %v1225_v24, %v4341_v2  ;;  %v1234_v63 = vrot.slane %v1225_v24, %v4344_v25 }
 0x1cf   : > { %1866 = vmatpush2.msra.mxu0 %v1731_v31  ;;  %1936 = vmatprep.subr.mxu1 %v1796_v52 }
 0x1d0   : > { %1867 = vmatprep.subr.mxu0 %v1730_v33  ;;  %1937 = vmatpush2.msra.mxu1 %v1795_v54 }
 0x1d1   : > { %1868 = vmatpush2.msra.mxu0 %v1729_v35  ;;  %1938 = vmatprep.subr.mxu1 %v1794_v56 }
 0x1d2   : > { %1869 = vmatprep.subr.mxu0 %v1728_v37  ;;  %1939 = vmatpush2.msra.mxu1 %v1793_v58 }
 0x1d3   : > { %1870 = vmatpush2.msra.mxu0 %v1727_v39  ;;  %1940 = vmatprep.subr.mxu1 %v1792_v60  ;;  %v1998_v60 = vld [vmem:[%s3821_s13 + $0xf8] sm:$0xff] }
 0x1d4   : > { %1871 = vmatprep.subr.mxu0 %v1726_v41  ;;  %1941 = vmatpush2.msra.mxu1 %v1791_v62  ;;  %v1241_v41 = vsub.s32 3, %v1228_v23  ;;  %v1996_v62 = vld [vmem:[%s3821_s13 + $0xe8] sm:$0xff]  ;;  %v1977_v23 = vld [vmem:[%s3821_s13 + $0x50] sm:$0xff] }
 0x1d5   : > { %1872 = vmatpush2.msra.mxu0 %v1725_v43  ;;  %1942 = vmatprep.subr.mxu1 %v1790_v3  ;;  %v1238_v43 = vrot.slane %v1225_v24, %v1237_v40  ;;  %v1994_v3 = vld [vmem:[%s3821_s13 + $0xd8] sm:$0xff]  ;;  %v2021_v40 = vld [vmem:[%s3821_s13 + $0x1b0] sm:$0xff] }
 0x1d6   : > { %1873 = vmatprep.subr.mxu0 %v1724_v45  ;;  %1943 = vmatpush2.msra.mxu1 %v1789_v6  ;;  %v1242_v44 = vrot.slane %v1225_v24, %v1241_v41  ;;  %v1992_v6 = vld [vmem:[%s3821_s13 + $0xc8] sm:$0xff] }
 0x1d7   : > { %1874 = vmatpush2.msra.mxu0 %v1723_v47  ;;  %1944 = vmatprep.subr.mxu1 %v1788_v9  ;;  %v1990_v9 = vld [vmem:[%s3821_s13 + $0xb8] sm:$0xff]  ;;  %v1976_v24 = vld [vmem:[%s3821_s13 + $0x48] sm:$0xff] }
 0x1d8   : > { %1875 = vmatprep.subr.mxu0 %v1722_v49  ;;  %1945 = vmatpush2.msra.mxu1 %v1787_v10  ;;  %v1989_v10 = vld [vmem:[%s3821_s13 + $0xb0] sm:$0xff]  ;;  %v2020_v41 = vld [vmem:[%s3821_s13 + $0x1a8] sm:$0xff] }
 0x1d9   : > { %1876 = vmatpush2.msra.mxu0 %v1721_v51  ;;  %1946 = vmatprep.subr.mxu1 %v1786_v12  ;;  %v1988_v12 = vld [vmem:[%s3821_s13 + $0xa8] sm:$0xff] }
 0x1da   : > { %1877 = vmatprep.subr.mxu0 %v1720_v53  ;;  %1947 = vmatpush2.msra.mxu1 %v1785_v13  ;;  %v1987_v13 = vld [vmem:[%s3821_s13 + $0xa0] sm:$0xff] }
 0x1db   : > { %1878 = vmatpush2.msra.mxu0 %v1719_v55  ;;  %1948 = vmatprep.subr.mxu1 %v1784_v14  ;;  %v1986_v14 = vld [vmem:[%s3821_s13 + $0x98] sm:$0xff] }
 0x1dc   : > { %1879 = vmatprep.subr.mxu0 %v1718_v57  ;;  %1949 = vmatpush2.msra.mxu1 %v1783_v15  ;;  %v1985_v15 = vld [vmem:[%s3821_s13 + $0x90] sm:$0xff] }
 0x1dd   : > { %1880 = vmatpush2.msra.mxu0 %v1717_v59  ;;  %1950 = vmatprep.subr.mxu1 %v1782_v16  ;;  %v1984_v16 = vld [vmem:[%s3821_s13 + $0x88] sm:$0xff] }
 0x1de   : > { %1881 = vmatprep.subr.mxu0 %v1716_v61  ;;  %1951 = vmatpush2.msra.mxu1 %v1781_v17  ;;  %v1997_v61 = vld [vmem:[%s3821_s13 + $0xf0] sm:$0xff]  ;;  %v1983_v17 = vld [vmem:[%s3821_s13 + $0x80] sm:$0xff] }
 0x1df   : > { %1882 = vmatpush2.msra.mxu0 %v1715_v0  ;;  %1952 = vmatprep.subr.mxu1 %v1780_v18  ;;  %v1995_v0 = vld [vmem:[%s3821_s13 + $0xe0] sm:$0xff]  ;;  %v1982_v18 = vld [vmem:[%s3821_s13 + $0x78] sm:$0xff] }
 0x1e0   : > { %1883 = vmatprep.subr.mxu0 %v1714_v4  ;;  %1953 = vmatpush2.msra.mxu1 %v1779_v19  ;;  %v1993_v4 = vld [vmem:[%s3821_s13 + $0xd0] sm:$0xff] }
 0x1e1   : > { %1884 = vmatpush2.msra.mxu0 %v1713_v7  ;;  %1954 = vmatprep.subr.mxu1 %v1778_v20  ;;  %v1991_v7 = vld [vmem:[%s3821_s13 + $0xc0] sm:$0xff]  ;;  %v1981_v19 = vld [vmem:[%s3821_s13 + $0x70] sm:$0xff]  ;;  %v1980_v20 = vld [vmem:[%s3821_s13 + $0x68] sm:$0xff] }
 0x1e2   : > { %1955 = vmatpush2.msra.mxu1 %v1777_v21  ;;  %2043 = vmatprep.subr.mxu0 %v1998_v60  ;;  %v1979_v21 = vld [vmem:[%s3821_s13 + $0x60] sm:$0xff]  ;;  %v2001_v60 = vld [vmem:[%s3821_s13 + $0x110] sm:$0xff] }
 0x1fd   : > { %v1313_v5 = vpop.f32.mrf.mxu0 }
 0x1fe   : > { %v1314_v1 = vadd.f32 %v1313_v5, %v1230_v8  ;;  %v1975_v5 = vld [vmem:[%s3821_s13 + $0x40] sm:$0xff]  ;;  %v1974_v8 = vld [vmem:[%s3821_s13 + $0x38] sm:$0xff] }
 0x1ff   : > { %v1384_v26 = vpop.f32.mrf.mxu1  ;;  %v1315_v27 = vpop.f32.mrf.mxu0 }
 0x200   : > { %v1316_v28 = vadd.f32 %v1315_v27, %v1234_v63  ;;  %v1385_v30 = vadd.f32 %v1384_v26, %v1314_v1  ;;  %v1973_v63 = vld [vmem:[%s3821_s13 + $0x30] sm:$0xff]  ;;  %v1972_v26 = vld [vmem:[%s3821_s13 + $0x28] sm:$0xff]  ;;  %v1971_v27 = vld [vmem:[%s3821_s13 + $0x20] sm:$0xff] }
 0x201   : > { %v1386_v29 = vpop.f32.mrf.mxu1  ;;  %v1970_v1 = vld [vmem:[%s3821_s13 + $0x18] sm:$0xff] }
 0x202   : > { %v1387_v32 = vadd.f32 %v1386_v29, %v1316_v28  ;;  %v1969_v28 = vld [vmem:[%s3821_s13 + $0x10] sm:$0xff]  ;;  %v1968_v29 = vld [vmem:[%s3821_s13 + $0x8] sm:$0xff] }
 0x21f   : > { %v1455_v31 = vpop.f32.mrf.mxu0 }
 0x220   : > { %v1456_v33 = vadd.f32 %v1455_v31, %v1385_v30  ;;  %v1967_v30 = vld [vmem:[%s3821_s13] sm:$0xff]  ;;  %v2030_v31 = vld [vmem:[%s3821_s13 + $0x1f8] sm:$0xff] }
 0x221   : > { %v1457_v34 = vpop.f32.mrf.mxu0 }
 0x222   : > { %v1458_v35 = vadd.f32 %v1457_v34, %v1387_v32  ;;  %v1673_v36 = vmul.f32 0.01, %v1456_v33  ;;  %v2029_v32 = vld [vmem:[%s3821_s13 + $0x1f0] sm:$0xff]  ;;  %v2027_v34 = vld [vmem:[%s3821_s13 + $0x1e0] sm:$0xff] }
 0x224   : > { %v1674_v37 = vmul.f32 0.01, %v1458_v35  ;;  %v1677_v39 = vmax.f32 %v1456_v33, %v1673_v36  ;;  %v2028_v33 = vld [vmem:[%s3821_s13 + $0x1e8] sm:$0xff]  ;;  %v2025_v36 = vld [vmem:[%s3821_s13 + $0x1d0] sm:$0xff] }
 0x226   : > { %v1678_v38 = vmax.f32 %v1458_v35, %v1674_v37  ;;  %v2026_v35 = vld [vmem:[%s3821_s13 + $0x1d8] sm:$0xff]  ;;  %v2024_v37 = vld [vmem:[%s3821_s13 + $0x1c8] sm:$0xff] }
 0x228   : > { %1885 = vmatprep.mubr.f32.mxu0 %v1678_v38  ;;  %v2023_v38 = vld [vmem:[%s3821_s13 + $0x1c0] sm:$0xff] }
 0x229   : > { %1886 = vmatmul.mubr.f32.vlgmr.msra.gmra.mxu0 %v1677_v39  ;;  %v2022_v39 = vld [vmem:[%s3821_s13 + $0x1b8] sm:$0xff] }
 0x22a   : > { %2044 = vmatpush1.msra.mxu0 %v1997_v61  ;;  %v2000_v61 = vld [vmem:[%s3821_s13 + $0x108] sm:$0xff] }
 0x22b   : > { %2045 = vmatprep.subr.mxu0 %v1996_v62  ;;  %v1999_v62 = vld [vmem:[%s3821_s13 + $0x100] sm:$0xff] }
 0x22c   : > { %2046 = vmatpush1.msra.mxu0 %v1995_v0  ;;  %v2149_v0 = vld [vmem:[%s3831_s25 + $0xf8] sm:$0xff] }
 0x22d   : > { %2047 = vmatprep.subr.mxu0 %v1994_v3  ;;  %v2133_v3 = vld [vmem:[%s3831_s25 + $0x78] sm:$0xff]  ;;  %2803 = vmatprep.subr.mxu1 %v2149_v0 }
 0x22e   : > { %2048 = vmatpush1.msra.mxu0 %v1993_v4  ;;  %v2148_v4 = vld [vmem:[%s3831_s25 + $0xf0] sm:$0xff] }
 0x22f   : > { %2049 = vmatprep.subr.mxu0 %v1992_v6  ;;  %v2132_v6 = vld [vmem:[%s3831_s25 + $0x70] sm:$0xff] }
 0x230   : > { %2050 = vmatpush1.msra.mxu0 %v1991_v7  ;;  %v2147_v7 = vld [vmem:[%s3831_s25 + $0xe8] sm:$0xff]  ;;  %v2239_v0 = vld [vmem:[%s3840_s21 + $0x50] sm:$0xff] }
 0x231   : > { %2051 = vmatprep.subr.mxu0 %v1990_v9  ;;  %v2131_v9 = vld [vmem:[%s3831_s25 + $0x68] sm:$0xff] }
 0x232   : > { %2052 = vmatpush1.msra.mxu0 %v1989_v10  ;;  %v2146_v10 = vld [vmem:[%s3831_s25 + $0xe0] sm:$0xff] }
 0x233   : > { %2053 = vmatprep.subr.mxu0 %v1988_v12  ;;  %v2130_v12 = vld [vmem:[%s3831_s25 + $0x60] sm:$0xff] }
 0x234   : > { %2054 = vmatpush1.msra.mxu0 %v1987_v13  ;;  %v2145_v13 = vld [vmem:[%s3831_s25 + $0xd8] sm:$0xff] }
 0x235   : > { %2055 = vmatprep.subr.mxu0 %v1986_v14  ;;  %v2129_v14 = vld [vmem:[%s3831_s25 + $0x58] sm:$0xff] }
 0x236   : > { %2056 = vmatpush1.msra.mxu0 %v1985_v15  ;;  %v2144_v15 = vld [vmem:[%s3831_s25 + $0xd0] sm:$0xff] }
 0x237   : > { %2057 = vmatprep.subr.mxu0 %v1984_v16  ;;  %v2128_v16 = vld [vmem:[%s3831_s25 + $0x50] sm:$0xff] }
 0x238   : > { %2058 = vmatpush1.msra.mxu0 %v1983_v17  ;;  %v2143_v17 = vld [vmem:[%s3831_s25 + $0xc8] sm:$0xff] }
 0x239   : > { %2059 = vmatprep.subr.mxu0 %v1982_v18  ;;  %v2127_v18 = vld [vmem:[%s3831_s25 + $0x48] sm:$0xff] }
 0x23a   : > { %2060 = vmatpush1.msra.mxu0 %v1981_v19  ;;  %v2142_v19 = vld [vmem:[%s3831_s25 + $0xc0] sm:$0xff] }
 0x23b   : > { %2061 = vmatprep.subr.mxu0 %v1980_v20  ;;  %v2126_v20 = vld [vmem:[%s3831_s25 + $0x40] sm:$0xff] }
 0x23c   : > { %2062 = vmatpush1.msra.mxu0 %v1979_v21  ;;  %v2141_v21 = vld [vmem:[%s3831_s25 + $0xb8] sm:$0xff] }
 0x23d   : > { %2063 = vmatprep.subr.mxu0 %v1978_v22  ;;  %v2125_v22 = vld [vmem:[%s3831_s25 + $0x38] sm:$0xff] }
 0x23e   : > { %2064 = vmatpush1.msra.mxu0 %v1977_v23  ;;  %v2140_v23 = vld [vmem:[%s3831_s25 + $0xb0] sm:$0xff] }
 0x23f   : > { %2065 = vmatprep.subr.mxu0 %v1976_v24  ;;  %v2124_v24 = vld [vmem:[%s3831_s25 + $0x30] sm:$0xff] }
 0x240   : > { %2066 = vmatpush1.msra.mxu0 %v1975_v5  ;;  %v2139_v5 = vld [vmem:[%s3831_s25 + $0xa8] sm:$0xff] }
 0x241   : > { %v1526_v42 = vpop.f32.mrf.mxu1  ;;  %2067 = vmatprep.subr.mxu0 %v1974_v8  ;;  %v2123_v8 = vld [vmem:[%s3831_s25 + $0x28] sm:$0xff] }
 0x242   : > { %v1527_v46 = vadd.f32 %v1526_v42, %v1238_v43  ;;  %2068 = vmatpush1.msra.mxu0 %v1973_v63  ;;  %v2019_v42 = vld [vmem:[%s3821_s13 + $0x1a0] sm:$0xff]  ;;  %v2018_v43 = vld [vmem:[%s3821_s13 + $0x198] sm:$0xff] }
 0x243   : > { %v1528_v45 = vpop.f32.mrf.mxu1  ;;  %2069 = vmatprep.subr.mxu0 %v1972_v26  ;;  %v1809_v63 = vld [vmem:[%s3814_s18] sm:$0x3] }
 0x244   : > { %v1529_v49 = vadd.f32 %v1528_v45, %v1242_v44  ;;  %2070 = vmatpush1.msra.mxu0 %v1971_v27  ;;  %v2017_v44 = vld [vmem:[%s3821_s13 + $0x190] sm:$0xff]  ;;  %v2016_v45 = vld [vmem:[%s3821_s13 + $0x188] sm:$0xff]  ;;  %v1814_v27 = vrot.slane %v1809_v63, %v4341_v2 }
 0x245   : > { %2071 = vmatprep.subr.mxu0 %v1970_v1  ;;  %v1818_v1 = vrot.slane %v1809_v63, %v4344_v25  ;;  %v2328_v63 = vld [vmem:[%s3848_s24 + $0x20] sm:$0xff] }
 0x246   : > { %2072 = vmatpush1.msra.mxu0 %v1969_v28 }
 0x247   : > { %2073 = vmatprep.subr.mxu0 %v1968_v29 }
 0x248   : > { %2074 = vmatpush1.msra.mxu0 %v1967_v30 }
 0x249   : > { %2075 = vmatprep.subr.mxu0 %v2030_v31 }
 0x24a   : > { %2076 = vmatpush2.msra.mxu0 %v2029_v32 }
 0x24b   : > { %2077 = vmatprep.subr.mxu0 %v2028_v33 }
 0x24c   : > { %2078 = vmatpush2.msra.mxu0 %v2027_v34 }
 0x24d   : > { %2079 = vmatprep.subr.mxu0 %v2026_v35 }
 0x24e   : > { %2080 = vmatpush2.msra.mxu0 %v2025_v36 }
 0x24f   : > { %2081 = vmatprep.subr.mxu0 %v2024_v37 }
 0x250   : > { %2082 = vmatpush2.msra.mxu0 %v2023_v38 }
 0x251   : > { %2083 = vmatprep.subr.mxu0 %v2022_v39  ;;  %v2138_v39 = vld [vmem:[%s3831_s25 + $0xa0] sm:$0xff] }
 0x252   : > { %2084 = vmatpush2.msra.mxu0 %v2021_v40  ;;  %v2122_v40 = vld [vmem:[%s3831_s25 + $0x20] sm:$0xff] }
 0x253   : > { %2085 = vmatprep.subr.mxu0 %v2020_v41  ;;  %v2137_v41 = vld [vmem:[%s3831_s25 + $0x98] sm:$0xff] }
 0x254   : > { %2086 = vmatpush2.msra.mxu0 %v2019_v42  ;;  %v2121_v42 = vld [vmem:[%s3831_s25 + $0x18] sm:$0xff] }
 0x255   : > { %2087 = vmatprep.subr.mxu0 %v2018_v43  ;;  %v2136_v43 = vld [vmem:[%s3831_s25 + $0x90] sm:$0xff] }
 0x256   : > { %2088 = vmatpush2.msra.mxu0 %v2017_v44  ;;  %v2120_v44 = vld [vmem:[%s3831_s25 + $0x10] sm:$0xff] }
 0x257   : > { %2089 = vmatprep.subr.mxu0 %v2016_v45  ;;  %v2135_v45 = vld [vmem:[%s3831_s25 + $0x88] sm:$0xff] }
 0x261   : > { %v1597_v47 = vpop.f32.mrf.mxu0 }
 0x262   : > { %v1668_v48 = vpop.f32.mrf.mxu1  ;;  %v1598_v50 = vadd.f32 %v1597_v47, %v1527_v46  ;;  %v2015_v46 = vld [vmem:[%s3821_s13 + $0x180] sm:$0xff]  ;;  %v2014_v47 = vld [vmem:[%s3821_s13 + $0x178] sm:$0xff] }
 0x263   : > { %v1599_v51 = vpop.f32.mrf.mxu0  ;;  %2090 = vmatpush2.msra.mxu0 %v2015_v46  ;;  %v2119_v46 = vld [vmem:[%s3831_s25 + $0x8] sm:$0xff] }
 0x264   : > { %v1669_v52 = vadd.f32 %v1668_v48, %v1598_v50  ;;  %v1600_v53 = vadd.f32 %v1599_v51, %v1529_v49  ;;  %v1670_v54 = vpop.f32.mrf.mxu1  ;;  %v2013_v48 = vld [vmem:[%s3821_s13 + $0x170] sm:$0xff]  ;;  %v2012_v49 = vld [vmem:[%s3821_s13 + $0x168] sm:$0xff]  ;;  %2091 = vmatprep.subr.mxu0 %v2014_v47  ;;  %v2011_v50 = vld [vmem:[%s3821_s13 + $0x160] sm:$0xff] }
 0x265   : > { %2092 = vmatpush2.msra.mxu0 %v2013_v48  ;;  %v2010_v51 = vld [vmem:[%s3821_s13 + $0x158] sm:$0xff]  ;;  %v2134_v47 = vld [vmem:[%s3831_s25 + $0x80] sm:$0xff] }
 0x266   : > { %v1671_v55 = vadd.f32 %v1670_v54, %v1600_v53  ;;  %v1675_v56 = vmul.f32 0.01, %v1669_v52  ;;  %2093 = vmatprep.subr.mxu0 %v2012_v49  ;;  %v2008_v53 = vld [vmem:[%s3821_s13 + $0x148] sm:$0xff]  ;;  %v2007_v54 = vld [vmem:[%s3821_s13 + $0x140] sm:$0xff] }
 0x267   : > { %2094 = vmatpush2.msra.mxu0 %v2011_v50  ;;  %v2118_v48 = vld [vmem:[%s3831_s25] sm:$0xff]  ;;  %v2031_v49 = vld [vmem:[%s3824_s22] sm:$0x3] }
 0x268   : > { %v1676_v57 = vmul.f32 0.01, %v1671_v55  ;;  %v1679_v59 = vmax.f32 %v1669_v52, %v1675_v56  ;;  %v2009_v52 = vld [vmem:[%s3821_s13 + $0x150] sm:$0xff]  ;;  %2095 = vmatprep.subr.mxu0 %v2010_v51  ;;  %v2036_v50 = vrot.slane %v2031_v49, %v4341_v2  ;;  %v2040_v51 = vrot.slane %v2031_v49, %v4344_v25  ;;  %v2241_v25 = vld [vmem:[%s3840_s21 + $0x60] sm:$0xff] }
 0x269   : > { %2096 = vmatpush2.msra.mxu0 %v2009_v52  ;;  %v2005_v56 = vld [vmem:[%s3821_s13 + $0x130] sm:$0xff] }
 0x26a   : > { %v1680_v58 = vmax.f32 %v1671_v55, %v1676_v57  ;;  %2097 = vmatprep.subr.mxu0 %v2008_v53  ;;  %v2006_v55 = vld [vmem:[%s3821_s13 + $0x138] sm:$0xff]  ;;  %v2004_v57 = vld [vmem:[%s3821_s13 + $0x128] sm:$0xff] }
 0x26b   : > { %2098 = vmatpush2.msra.mxu0 %v2007_v54  ;;  %v2242_v2 = vld [vmem:[%s3840_s21 + $0x68] sm:$0xff] }
 0x26c   : > { %1956 = vmatprep.mubr.f32.mxu1 %v1680_v58  ;;  %2099 = vmatprep.subr.mxu0 %v2006_v55  ;;  %v2003_v58 = vld [vmem:[%s3821_s13 + $0x120] sm:$0xff] }
 0x26d   : > { %1957 = vmatmul.mubr.f32.vlgmr.msra.gmra.mxu1 %v1679_v59  ;;  %2100 = vmatpush2.msra.mxu0 %v2005_v56  ;;  %v2002_v59 = vld [vmem:[%s3821_s13 + $0x118] sm:$0xff]  ;;  %s4607_s13 = sld [smem:[#allocation41_spill]] }
 0x26e   : > { %2101 = vmatprep.subr.mxu0 %v2004_v57  ;;  %2804 = vmatpush3.msra.mxu1 %v2133_v3  ;;  %v2238_v3 = vld [vmem:[%s3840_s21 + $0x48] sm:$0xff] }
 0x26f   : > { %2102 = vmatpush2.msra.mxu0 %v2003_v58  ;;  %2805 = vmatprep.subr.mxu1 %v2148_v4  ;;  %v2237_v4 = vld [vmem:[%s3840_s21 + $0x40] sm:$0xff] }
 0x270   : > { %2103 = vmatprep.subr.mxu0 %v2002_v59  ;;  %2806 = vmatpush3.msra.mxu1 %v2132_v6  ;;  %v2236_v6 = vld [vmem:[%s3840_s21 + $0x38] sm:$0xff] }
 0x271   : > { %2104 = vmatpush2.msra.mxu0 %v2001_v60  ;;  %2807 = vmatprep.subr.mxu1 %v2147_v7  ;;  %v2244_v60 = vld [vmem:[%s3840_s21 + $0x78] sm:$0xff]  ;;  %v2235_v7 = vld [vmem:[%s3840_s21 + $0x30] sm:$0xff] }
 0x272   : > { %2105 = vmatprep.subr.mxu0 %v2000_v61  ;;  %2808 = vmatpush3.msra.mxu1 %v2131_v9  ;;  %v2243_v61 = vld [vmem:[%s3840_s21 + $0x70] sm:$0xff]  ;;  %v2234_v9 = vld [vmem:[%s3840_s21 + $0x28] sm:$0xff] }
 0x273   : > { %2106 = vmatpush2.msra.mxu0 %v1999_v62  ;;  %2809 = vmatprep.subr.mxu1 %v2146_v10  ;;  %v2240_v62 = vld [vmem:[%s3840_s21 + $0x58] sm:$0xff]  ;;  %v2233_v10 = vld [vmem:[%s3840_s21 + $0x20] sm:$0xff]  ;;  %s899_s22 = scalar_lea.vmem %s4607_s13, %s2789_s26 }
 0x274   : > { %2907 = vmatprep.subr.mxu0 %v3493_v11  ;;  %2810 = vmatpush3.msra.mxu1 %v2130_v12  ;;  %v2232_v12 = vld [vmem:[%s3840_s21 + $0x18] sm:$0xff] }
 0x275   : > { %2811 = vmatprep.subr.mxu1 %v2145_v13  ;;  %v2231_v13 = vld [vmem:[%s3840_s21 + $0x10] sm:$0xff] }
 0x276   : > { %2812 = vmatpush3.msra.mxu1 %v2129_v14  ;;  %v2230_v14 = vld [vmem:[%s3840_s21 + $0x8] sm:$0xff] }
 0x277   : > { %2813 = vmatprep.subr.mxu1 %v2144_v15  ;;  %v2229_v15 = vld [vmem:[%s3840_s21] sm:$0xff] }
 0x278   : > { %2814 = vmatpush3.msra.mxu1 %v2128_v16  ;;  %v2339_v16 = vld [vmem:[%s3848_s24 + $0x78] sm:$0xff] }
 0x279   : > { %2815 = vmatprep.subr.mxu1 %v2143_v17  ;;  %v2338_v17 = vld [vmem:[%s3848_s24 + $0x70] sm:$0xff] }
 0x27a   : > { %2816 = vmatpush3.msra.mxu1 %v2127_v18  ;;  %v2337_v18 = vld [vmem:[%s3848_s24 + $0x68] sm:$0xff] }
 0x27b   : > { %2817 = vmatprep.subr.mxu1 %v2142_v19  ;;  %v2336_v19 = vld [vmem:[%s3848_s24 + $0x60] sm:$0xff] }
 0x27c   : > { %2818 = vmatpush3.msra.mxu1 %v2126_v20  ;;  %v2335_v20 = vld [vmem:[%s3848_s24 + $0x58] sm:$0xff] }
 0x27d   : > { %2819 = vmatprep.subr.mxu1 %v2141_v21  ;;  %v2334_v21 = vld [vmem:[%s3848_s24 + $0x50] sm:$0xff] }
 0x27e   : > { %2820 = vmatpush3.msra.mxu1 %v2125_v22  ;;  %v2333_v22 = vld [vmem:[%s3848_s24 + $0x48] sm:$0xff] }
 0x27f   : > { %2821 = vmatprep.subr.mxu1 %v2140_v23  ;;  %v2332_v23 = vld [vmem:[%s3848_s24 + $0x40] sm:$0xff] }
 0x280   : > { %2822 = vmatpush3.msra.mxu1 %v2124_v24  ;;  %v2331_v24 = vld [vmem:[%s3848_s24 + $0x38] sm:$0xff] }
 0x281   : > { %2823 = vmatprep.subr.mxu1 %v2139_v5  ;;  %v2330_v5 = vld [vmem:[%s3848_s24 + $0x30] sm:$0xff] }
 0x282   : > { %2824 = vmatpush3.msra.mxu1 %v2123_v8  ;;  %v2329_v8 = vld [vmem:[%s3848_s24 + $0x28] sm:$0xff] }
 0x283   : > { %2825 = vmatprep.subr.mxu1 %v2138_v39 }
 0x284   : > { %2826 = vmatpush3.msra.mxu1 %v2122_v40 }
 0x285   : > { %2827 = vmatprep.subr.mxu1 %v2137_v41 }
 0x286   : > { %2828 = vmatpush3.msra.mxu1 %v2121_v42  ;;  %v2792_v42 = vld [vmem:[%s786_s2] ss:$0 sm:$0xff] }
 0x287   : > { %2829 = vmatprep.subr.mxu1 %v2136_v43 }
 0x288   : > { %2830 = vmatpush3.msra.mxu1 %v2120_v44 }
 0x289   : > { %2831 = vmatprep.subr.mxu1 %v2135_v45 }
 0x28a   : > { %2832 = vmatpush3.msra.mxu1 %v2119_v46 }
 0x28b   : > { %2833 = vmatprep.subr.mxu1 %v2134_v47 }
 0x28c   : > { %2834 = vmatpush3.msra.mxu1 %v2118_v48 }
 0x28d   : > { %2872 = vmatprep.subr.mxu1 %v3493_v11 }
 0x2e9   : > { %v1887_v26 = vpop.f32.mrf.mxu0 }
 0x2ea   : > { %v1888_v29 = vadd.f32 %v1887_v26, %v1814_v27  ;;  %v2790_v27 = vld [vmem:[%s752_s14] ss:$0 sm:$0xff] }
 0x2eb   : > { %v1889_v28 = vpop.f32.mrf.mxu0 }
 0x2ec   : > { %v1890_v31 = vadd.f32 %v1889_v28, %v1818_v1 }
 0x32d   : > { %v1958_v30 = vpop.f32.mrf.mxu1 }
 0x32e   : > { %v1959_v32 = vadd.f32 %v1958_v30, %v1888_v29 }
 0x32f   : > { %v1960_v33 = vpop.f32.mrf.mxu1 }
 0x330   : > { %v1961_v34 = vadd.f32 %v1960_v33, %v1890_v31  ;;  %v1963_v35 = vmul.f32 0.01, %v1959_v32  ;;  %v2326_v33 = vld [vmem:[%s3848_s24 + $0x10] sm:$0xff] }
 0x332   : > { %v1964_v36 = vmul.f32 0.01, %v1961_v34  ;;  %v1965_v38 = vmax.f32 %v1959_v32, %v1963_v35  ;;  %v2327_v32 = vld [vmem:[%s3848_s24 + $0x18] sm:$0xff]  ;;  %v2324_v35 = vld [vmem:[%s3848_s24] sm:$0xff] }
 0x334   : > { %v1966_v37 = vmax.f32 %v1961_v34, %v1964_v36  ;;  %v2325_v34 = vld [vmem:[%s3848_s24 + $0x8] sm:$0xff] }
 0x335   : > { %v2791_v36 = vld [vmem:[%s769_s30] ss:$0 sm:$0xff] }
 0x336   : > { %2107 = vmatprep.mubr.f32.mxu0 %v1966_v37 }
 0x337   : > { %2108 = vmatmul.mubr.f32.vlgmr.msra.gmra.mxu0 %v1965_v38 }
 0x338   : > { %2939 = vmatprep.mubr.msk.f32.mxu0 %vm3494_vm0, %v3493_v11  ;;  %2908 = vmatpush3.msra.mxu0 %v2339_v16 }
 0x339   : > { %2909 = vmatprep.subr.mxu0 %v3493_v11 }
 0x33a   : > { %2910 = vmatpush3.msra.mxu0 %v2338_v17 }
 0x33b   : > { %2911 = vmatprep.subr.mxu0 %v3493_v11 }
 0x33c   : > { %2912 = vmatpush3.msra.mxu0 %v2337_v18 }
 0x33d   : > { %2913 = vmatprep.subr.mxu0 %v3493_v11 }
 0x33e   : > { %2914 = vmatpush3.msra.mxu0 %v2336_v19 }
 0x33f   : > { %2915 = vmatprep.subr.mxu0 %v3493_v11 }
 0x340   : > { %2916 = vmatpush3.msra.mxu0 %v2335_v20 }
 0x341   : > { %2917 = vmatprep.subr.mxu0 %v3493_v11 }
 0x342   : > { %2918 = vmatpush3.msra.mxu0 %v2334_v21 }
 0x343   : > { %2919 = vmatprep.subr.mxu0 %v3493_v11 }
 0x344   : > { %2920 = vmatpush3.msra.mxu0 %v2333_v22 }
 0x345   : > { %2921 = vmatprep.subr.mxu0 %v3493_v11 }
 0x346   : > { %2922 = vmatpush3.msra.mxu0 %v2332_v23 }
 0x347   : > { %2923 = vmatprep.subr.mxu0 %v3493_v11 }
 0x348   : > { %2924 = vmatpush3.msra.mxu0 %v2331_v24 }
 0x349   : > { %2925 = vmatprep.subr.mxu0 %v3493_v11 }
 0x34a   : > { %2926 = vmatpush3.msra.mxu0 %v2330_v5 }
 0x34b   : > { %2927 = vmatprep.subr.mxu0 %v3493_v11 }
 0x34c   : > { %2928 = vmatpush3.msra.mxu0 %v2329_v8 }
 0x34d   : > { %2929 = vmatprep.subr.mxu0 %v3493_v11 }
 0x34e   : > { %2930 = vmatpush3.msra.mxu0 %v2328_v63 }
 0x34f   : > { %2931 = vmatprep.subr.mxu0 %v3493_v11 }
 0x350   : > { %2932 = vmatpush3.msra.mxu0 %v2327_v32 }
 0x351   : > { %2933 = vmatprep.subr.mxu0 %v3493_v11 }
 0x352   : > { %2934 = vmatpush3.msra.mxu0 %v2326_v33 }
 0x353   : > { %2935 = vmatprep.subr.mxu0 %v3493_v11 }
 0x354   : > { %2936 = vmatpush3.msra.mxu0 %v2325_v34 }
 0x355   : > { %2937 = vmatprep.subr.mxu0 %v3493_v11 }
 0x356   : > { %2938 = vmatpush3.msra.mxu0 %v2324_v35 }
 0x3f7   : > { %v2109_v52 = vpop.f32.mrf.mxu0 }
 0x3f8   : > { %v2110_v53 = vadd.f32 %v2109_v52, %v2036_v50 }
 0x3f9   : > { %v2111_v54 = vpop.f32.mrf.mxu0 }
 0x3fa   : > { %v2112_v55 = vadd.f32 %v2111_v54, %v2040_v51  ;;  %v2114_v56 = vmul.f32 0.01, %v2110_v53 }
 0x3fc   : > { %v2115_v57 = vmul.f32 0.01, %v2112_v55  ;;  %v2116_v59 = vmax.f32 %v2110_v53, %v2114_v56 }
 0x3fe   : > { %v2117_v58 = vmax.f32 %v2112_v55, %v2115_v57 }
 0x400   : > { %2221 = vmatprep.mubr.f32.mxu1 %v2117_v58 }
 0x401   : > { %2222 = vmatmul.mubr.f32.vlgmr.msra.gmra.mxu1 %v2116_v59 }
 0x402   : > { %2873 = vmatpush3.msra.mxu1 %v2244_v60  ;;  %2904 = vmatprep.mubr.msk.f32.mxu1 %vm3494_vm0, %v3493_v11 }
 0x403   : > { %2874 = vmatprep.subr.mxu1 %v3493_v11 }
 0x404   : > { %2875 = vmatpush3.msra.mxu1 %v2243_v61 }
 0x405   : > { %2876 = vmatprep.subr.mxu1 %v3493_v11 }
 0x406   : > { %2877 = vmatpush3.msra.mxu1 %v2242_v2 }
 0x407   : > { %2878 = vmatprep.subr.mxu1 %v3493_v11 }
 0x408   : > { %2879 = vmatpush3.msra.mxu1 %v2241_v25 }
 0x409   : > { %2880 = vmatprep.subr.mxu1 %v3493_v11 }
 0x40a   : > { %2881 = vmatpush3.msra.mxu1 %v2240_v62 }
 0x40b   : > { %2882 = vmatprep.subr.mxu1 %v3493_v11 }
 0x40c   : > { %2883 = vmatpush3.msra.mxu1 %v2239_v0 }
 0x40d   : > { %2884 = vmatprep.subr.mxu1 %v3493_v11 }
 0x40e   : > { %2885 = vmatpush3.msra.mxu1 %v2238_v3 }
 0x40f   : > { %2886 = vmatprep.subr.mxu1 %v3493_v11 }
 0x410   : > { %2887 = vmatpush3.msra.mxu1 %v2237_v4 }
 0x411   : > { %2888 = vmatprep.subr.mxu1 %v3493_v11 }
 0x412   : > { %2889 = vmatpush3.msra.mxu1 %v2236_v6 }
 0x413   : > { %2890 = vmatprep.subr.mxu1 %v3493_v11 }
 0x414   : > { %2891 = vmatpush3.msra.mxu1 %v2235_v7 }
 0x415   : > { %2892 = vmatprep.subr.mxu1 %v3493_v11 }
 0x416   : > { %2893 = vmatpush3.msra.mxu1 %v2234_v9 }
 0x417   : > { %2894 = vmatprep.subr.mxu1 %v3493_v11 }
 0x418   : > { %2895 = vmatpush3.msra.mxu1 %v2233_v10 }
 0x419   : > { %2896 = vmatprep.subr.mxu1 %v3493_v11 }
 0x41a   : > { %2897 = vmatpush3.msra.mxu1 %v2232_v12 }
 0x41b   : > { %2898 = vmatprep.subr.mxu1 %v3493_v11 }
 0x41c   : > { %2899 = vmatpush3.msra.mxu1 %v2231_v13 }
 0x41d   : > { %2900 = vmatprep.subr.mxu1 %v3493_v11 }
 0x41e   : > { %2901 = vmatpush3.msra.mxu1 %v2230_v14 }
 0x41f   : > { %2902 = vmatprep.subr.mxu1 %v3493_v11 }
 0x420   : > { %2903 = vmatpush3.msra.mxu1 %v2229_v15 }
 0x4c1   : > { %v2835_v26 = vpop.f32.mrf.mxu1 }
 0x4c3   : > { %v2836_v1 = vpop.f32.mrf.mxu1 }
 0x4c4   : > { %v2837_v28 = vadd.f32 %v2836_v1, %v2835_v26 }
 0x4c6   : > { %v2224_v29 = vadd.f32 %v2837_v28, %v2790_v27 }
 0x4c8   : > { %v2227_v30 = vmul.f32 0.01, %v2224_v29 }
 0x4ca   : > { %v2228_v31 = vmax.f32 %v2224_v29, %v2227_v30 }
 0x4cc   : > { %2905 = vmatmul.mubr.f32.vlgmr.msra.gmra.mxu1 %v2228_v31 }
 0x58c   : > { %v2318_v37 = vpop.f32.mrf.mxu1 }
 0x58d   : > { %v2319_v38 = vadd.f32 %v2791_v36, %v2318_v37 }
 0x58e   : > { %v2906_v39 = vpop.f32.mrf.mxu1 }
 0x58f   : > { %v2322_v40 = vmul.f32 0.01, %v2319_v38 }
 0x591   : > { %v2323_v41 = vmax.f32 %v2319_v38, %v2322_v40 }
 0x593   : > { %2940 = vmatmul.mubr.f32.vlgmr.msra.gmra.mxu0 %v2323_v41 }
 0x653   : > { %v2413_v43 = vpop.f32.mrf.mxu0 }
 0x654   : > { %v2414_v44 = vadd.f32 %v2792_v42, %v2413_v43 }
 0x655   : > { %v2941_v45 = vpop.f32.mrf.mxu0 }
 0x656   : > { %v2417_v46 = vmul.f32 0.01, %v2414_v44 }
 0x658   : > { %v2418_v11 = vmax.f32 %v2414_v44, %v2417_v46 }
 0x65a   : > { %2419 = vst [vmem:[%s899_s22] sm:$0xff] %v2418_v11 }
 0x65b PF: > { %s4608_s25 = sld [smem:[#allocation31_spill]]  ;;  %s4613_s28 = smov %s3469_s29 }
 0x65c   : > { %s4610_s26 = sld [smem:[#allocation29_spill]] }
 0x65d   : > { %s4611_s27 = sld [smem:[#allocation34_spill]] }
 0x65e   : > { %s4612_s14 = sld [smem:[#allocation32_spill]] }
 0x661   : > { %s44_s30 = sadd.s32 1, %s4608_s25   ;;  %s4609_s25 = sld [smem:[#allocation28_spill]] }
 0x662   : > { %p41_p9 = scmp.ge.s32.totalorder %s44_s30, 4  }
 0x664   : > { %s4614_s29 = smov %s4612_s14  ;;  %43 = sbr.rel (!%p41_p9) target bundleno = 24 (0x18), region = 248 }
 0x669   :  { %2445 = vsyncpa [#allocation3], 1 }
 0x66a   :  { %2447 = vsyncpa [#allocation3 + $0x1], 1 }
 0x66b   :  { %2448 = vsyncpa [#allocation5], 1 }
 0x66c   :  { %2450 = vsyncpa [#allocation5 + $0x1], 1 }
 0x66d   :  { %2451 = vsyncpa [#allocation8], 1 }
 0x66e   :  { %2453 = vsyncpa [#allocation8 + $0x1], 1 }
 0x66f   :  { %2454 = vsyncpa [#allocation11], 1 }
 0x670   :  { %2456 = vsyncpa [#allocation11 + $0x1], 1 }
 0x671   :  { %2457 = vsyncpa [#allocation14], 1 }
 0x672   :  { %2459 = vsyncpa [#allocation14 + $0x1], 1 }
 0x673   :  { %2460 = vsyncpa [#allocation17], 1 }
 0x674   :  { %2462 = vsyncpa [#allocation17 + $0x1], 1 }
 0x675   :  { %2463 = vsyncpa [#allocation20], 1 }
 0x676   :  { %2465 = vsyncpa [#allocation20 + $0x1], 1 }

</bundles_post_ra>
